<compile_context>
chip_gen: v5e
topology: v5e:2x2
jax: 0.10.0
libtpu: 0.0.40
codegen_flags: <defaults>
</compile_context>

<pallas_src>
import functools

import jax
import jax.numpy as jnp
from jax.experimental import pallas as pl
from jax.experimental.pallas import tpu as pltpu

K0 = 5       # conv0 kernel size
PAD0 = 2     # conv0 padding
KS = 7       # conv_spatial kernel size
PADS = 9     # conv_spatial padding (== dilated reach)
DIL = 3      # conv_spatial dilation

TOP = 16     # top halo rows in the scratch    (>= PADS, multiple of 8)
BOT = 16     # bottom halo rows in the scratch (>= PADS, multiple of 8)
GAP = 16     # zero rows between stacked images (>= PADS, multiple of 8)


def _ilka_kernel(x_ref, m0_ref, b0_ref, ms_ref, bs_ref, m1_ref, b1_ref,
                 o_ref, pad_ref, cat_ref, *, h, b_tile):
    # x_ref block: (b_tile*H, W*C) — rows of b_tile images, lanes are (w, c).
    _, WC = x_ref.shape
    H = h
    STRIDE = H + GAP
    SPAN = b_tile * H + (b_tile - 1) * GAP
    mm_dtype = cat_ref.dtype

    x = x_ref[...]                                        # (b_tile*H, WC) f32

    # Halo / gap zeroing: once per grid step (covers all b_tile images).
    # Re-done each step so the kernel stays correct when the batch grid is
    # split across TensorCores ("parallel").
    pad_ref[:TOP, :] = jnp.zeros((TOP, WC), jnp.float32)
    pad_ref[TOP + SPAN:TOP + SPAN + BOT, :] = jnp.zeros((BOT, WC), jnp.float32)
    for b in range(1, b_tile):
        g = TOP + b * STRIDE - GAP
        pad_ref[g:g + GAP, :] = jnp.zeros((GAP, WC), jnp.float32)

    # ---- conv0: depthwise 5x5, padding=2 ---------------------------------
    # The (kx, channel) taps are folded into banded matrices (wrapper-side);
    # only the ky (row) shift is realized here, via the halo scratch.  The
    # K0 row-shifted windows are concatenated along lanes into one staging
    # LHS so the whole conv is a single matmul with K = K0*WC.
    for b in range(b_tile):
        pad_ref[TOP + b * STRIDE:TOP + b * STRIDE + H, :] = x[b * H:(b + 1) * H, :]
    for ky in range(K0):
        r = TOP + ky - PAD0
        cat_ref[:, ky * WC:(ky + 1) * WC] = pad_ref[r:r + SPAN, :].astype(mm_dtype)
    s = jnp.dot(cat_ref[:, :K0 * WC], m0_ref[...],
                preferred_element_type=jnp.float32) + b0_ref[...]   # (SPAN, WC)

    # ---- conv_spatial: depthwise 7x7, dilation=3, padding=9 --------------
    # Only the per-image interiors of `s` are written back (gap rows in the
    # span are garbage and must stay zero in the scratch).
    for b in range(b_tile):
        pad_ref[TOP + b * STRIDE:TOP + b * STRIDE + H, :] = \
            s[b * STRIDE:b * STRIDE + H, :]
    for ky in range(KS):
        r = TOP + ky * DIL - PADS
        cat_ref[:, ky * WC:(ky + 1) * WC] = pad_ref[r:r + SPAN, :].astype(mm_dtype)
    s2 = jnp.dot(cat_ref[...], ms_ref[...],
                 preferred_element_type=jnp.float32) + bs_ref[...]  # (SPAN, WC)

    # ---- conv1: pointwise 1x1 on all b_tile*H rows at once ---------------
    c = jnp.dot(x.astype(mm_dtype), m1_ref[...],
                preferred_element_type=jnp.float32) + b1_ref[...]   # (b_tile*H, WC)

    # ---- u * s_attn * c_attn + shortcut  (nopw=1: u == shortcut == x) ----
    for b in range(b_tile):
        xb = x[b * H:(b + 1) * H, :]
        o_ref[b * H:(b + 1) * H, :] = (
            xb * s2[b * STRIDE:b * STRIDE + H, :] * c[b * H:(b + 1) * H, :] + xb)
    # TODO(synk): nopw=0 branch (proj_1 -> GELU -> ... -> proj_2) is not
    # instantiated by the default constructor and is therefore not emitted.


def _band_matrices(wk, K, pad, dil, W, C):
    """Fold the (kx, channel) taps of a depthwise conv into per-ky banded
    (W*C, W*C) matrices: M[ky, w_in*C+c, w_out*C+c] = wk[ky, kx, c] where
    w_in = w_out + kx*dil - pad (zero outside [0, W))."""
    wk = wk.astype(jnp.float32)                           # (K, K, C) = (ky, kx, c)
    wi = jnp.arange(W)
    eye_c = jnp.eye(C, dtype=jnp.float32)
    m = jnp.zeros((K, W, C, W, C), jnp.float32)
    for kx in range(K):
        off = kx * dil - pad
        sel = (wi[:, None] == (wi[None, :] + off)).astype(jnp.float32)  # (Win, Wout)
        m = m + (sel[None, :, None, :, None]
                 * eye_c[None, None, :, None, :]
                 * wk[:, kx, :][:, None, :, None, None])
    return m.reshape(K, W * C, W * C)


def _flatten_bias(b, W, C):
    """(1,1,C) per-channel bias -> (1, W*C) lane-layout bias (lane = w*C + c)."""
    return jnp.tile(b.reshape(1, C).astype(jnp.float32), (1, W))


def ilka_pallas(x_nchw, params, *, b_tile=None, mm_dtype=jnp.float32):
    w0, b0, ws, bs, w1, b1 = params
    N, C, H, W = x_nchw.shape
    WC = W * C
    if b_tile is None:
        b_tile = 2 if (N % 2 == 0 and N >= 2) else 1
    assert N % b_tile == 0, (N, b_tile)

    # NCHW -> lane-dense (N*H, W*C).  (Interface kept NCHW to match the
    # PyTorch module; an NHWC end-to-end model would drop these transposes.)
    x = jnp.transpose(x_nchw, (0, 2, 3, 1)).astype(jnp.float32).reshape(N * H, WC)

    # Pre-fold conv weights into lane-layout, tap-stacked matrices (once).
    m0 = _band_matrices(w0, K0, PAD0, 1, W, C).reshape(K0 * WC, WC).astype(mm_dtype)
    ms = _band_matrices(ws, KS, PADS, DIL, W, C).reshape(KS * WC, WC).astype(mm_dtype)
    m1 = jnp.kron(jnp.eye(W, dtype=jnp.float32),
                  w1.astype(jnp.float32).T).astype(mm_dtype)        # (WC, WC)
    b0f = _flatten_bias(b0, W, C)
    bsf = _flatten_bias(bs, W, C)
    b1f = _flatten_bias(b1, W, C)

    BH = b_tile * H
    SPAN = b_tile * H + (b_tile - 1) * GAP
    ROWS = TOP + SPAN + BOT
    steps = N // b_tile
    mm_bytes = jnp.dtype(mm_dtype).itemsize

    flops_per_step = (2 * SPAN * (K0 * WC) * WC          # conv0 matmul
                      + 2 * SPAN * (KS * WC) * WC        # conv_spatial matmul
                      + 2 * BH * WC * WC                 # conv1 matmul
                      + 4 * BH * WC)                     # combine
    bytes_accessed = (2 * N * H * WC * 4                 # x in + out
                      + ((K0 + KS + 1) * WC * WC) * mm_bytes
                      + 3 * WC * 4)
    cost = pl.CostEstimate(flops=int(steps * flops_per_step),
                           transcendentals=0,
                           bytes_accessed=int(bytes_accessed))

    kernel = functools.partial(_ilka_kernel, h=H, b_tile=b_tile)

    out = pl.pallas_call(
        kernel,
        out_shape=jax.ShapeDtypeStruct((N * H, WC), jnp.float32),
        grid_spec=pltpu.PrefetchScalarGridSpec(
            num_scalar_prefetch=0,
            grid=(steps,),
            in_specs=[
                pl.BlockSpec((BH, WC), lambda n: (n, 0)),           # x rows
                pl.BlockSpec((K0 * WC, WC), lambda n: (0, 0)),      # m0 (stacked)
                pl.BlockSpec((1, WC), lambda n: (0, 0)),            # b0
                pl.BlockSpec((KS * WC, WC), lambda n: (0, 0)),      # ms (stacked)
                pl.BlockSpec((1, WC), lambda n: (0, 0)),            # bs
                pl.BlockSpec((WC, WC), lambda n: (0, 0)),           # m1
                pl.BlockSpec((1, WC), lambda n: (0, 0)),            # b1
            ],
            out_specs=pl.BlockSpec((BH, WC), lambda n: (n, 0)),
            scratch_shapes=[
                pltpu.VMEM((ROWS, WC), jnp.float32),                # row-halo pad
                pltpu.VMEM((SPAN, KS * WC), mm_dtype),              # tap-fused LHS
            ],
        ),
        compiler_params=pltpu.CompilerParams(
            dimension_semantics=("parallel",),
            vmem_limit_bytes=32 * 1024 * 1024),
        cost_estimate=cost,
    )(x, m0, b0f, ms, bsf, m1, b1f)

    out = out.reshape(N, H, W, C)
    return jnp.transpose(out, (0, 3, 1, 2))               # back to NCHW


def ilka_reference(x_nchw, params):
    """Pure-JAX reference (lax convs) for correctness checking."""
    w0, b0, ws, bs, w1, b1 = params
    x = jnp.transpose(x_nchw, (0, 2, 3, 1)).astype(jnp.float32)
    C = x.shape[-1]
    k0 = w0.reshape(K0, K0, 1, C)
    s = jax.lax.conv_general_dilated(
        x, k0, window_strides=(1, 1), padding=[(PAD0, PAD0), (PAD0, PAD0)],
        dimension_numbers=("NHWC", "HWIO", "NHWC"), feature_group_count=C) + b0
    ks = ws.reshape(KS, KS, 1, C)
    s = jax.lax.conv_general_dilated(
        s, ks, window_strides=(1, 1), padding=[(PADS, PADS), (PADS, PADS)],
        rhs_dilation=(DIL, DIL),
        dimension_numbers=("NHWC", "HWIO", "NHWC"), feature_group_count=C) + bs
    c = jnp.einsum("nhwc,oc->nhwo", x, w1) + b1
    out = x * s * c + x
    return jnp.transpose(out, (0, 3, 1, 2))


if __name__ == "__main__":
    N, C, H, W = 4, 8, 16, 16                 # dim = C = 8, W*C = 128 (lane-dense)
    key = jax.random.PRNGKey(0)
    kx, kw0, kb0, kws, kbs, kw1, kb1 = jax.random.split(key, 7)
    scale = 0.1
    x = jax.random.normal(kx, (N, C, H, W), jnp.float32)          # NCHW input
    # Deterministic synthetic parameters (shapes follow ILKA.__init__, dim=C):
    #   conv0:        (C,1,5,5) depthwise  -> stored (5,5,C)
    #   conv_spatial: (C,1,7,7) depthwise  -> stored (7,7,C)
    #   conv1:        (C,C,1,1) pointwise  -> stored (C,C)
    w0 = scale * jax.random.normal(kw0, (K0, K0, C), jnp.float32)
    b0 = scale * jax.random.normal(kb0, (1, 1, C), jnp.float32)
    ws = scale * jax.random.normal(kws, (KS, KS, C), jnp.float32)
    bs = scale * jax.random.normal(kbs, (1, 1, C), jnp.float32)
    w1 = scale * jax.random.normal(kw1, (C, C), jnp.float32)
    b1 = scale * jax.random.normal(kb1, (1, 1, C), jnp.float32)
    params = (w0, b0, ws, bs, w1, b1)

    ref = jax.block_until_ready(ilka_reference(x, params))

    # f32 matmul path: bit-faithful to the PyTorch module numerics (1e-3).
    out = jax.block_until_ready(ilka_pallas(x, params, b_tile=2,
                                            mm_dtype=jnp.float32))
    assert out.shape == x.shape, (out.shape, x.shape)
    err = float(jnp.max(jnp.abs(out - ref)))
    assert err < 1e-3, f"f32 max abs error {err}"

    # bf16 weight/LHS path (native MXU rate, half the weight VMEM); f32 accum.
    out_bf16 = jax.block_until_ready(ilka_pallas(x, params, b_tile=2,
                                                 mm_dtype=jnp.bfloat16))
    err_bf16 = float(jnp.max(jnp.abs(out_bf16 - ref)))
    assert err_bf16 < 1e-1, f"bf16 max abs error {err_bf16}"

    print("KERNEL_OK")
</pallas_src>

<mosaic_0001>
module attributes {stable_mosaic.version = 11 : i64} {
  func.func @_ilka_kernel(%arg0: i32, %arg1: memref<32x128xf32, #tpu.memory_space<vmem>>, %arg2: memref<640x128xf32, #tpu.memory_space<vmem>>, %arg3: memref<1x128xf32, #tpu.memory_space<vmem>>, %arg4: memref<896x128xf32, #tpu.memory_space<vmem>>, %arg5: memref<1x128xf32, #tpu.memory_space<vmem>>, %arg6: memref<128x128xf32, #tpu.memory_space<vmem>>, %arg7: memref<1x128xf32, #tpu.memory_space<vmem>>, %arg8: memref<32x128xf32, #tpu.memory_space<vmem>>, %arg9: memref<80x128xf32, #tpu.memory_space<vmem>>, %arg10: memref<48x896xf32, #tpu.memory_space<vmem>>) attributes {dimension_semantics = [#tpu.dimension_semantics<parallel>], iteration_bounds = array<i64: 2>, scalar_prefetch = 0 : i64, scratch_operands = 2 : i64, tpu.core_type = #tpu.core_type<tc>, window_params = [{transform_indices = @transform_0, window_bounds = array<i64: 32, 128>}, {pipeline_mode = #tpu.pipeline_mode<synchronous>, transform_indices = @transform_1, window_bounds = array<i64: 640, 128>}, {pipeline_mode = #tpu.pipeline_mode<synchronous>, transform_indices = @transform_2, window_bounds = array<i64: 1, 128>}, {pipeline_mode = #tpu.pipeline_mode<synchronous>, transform_indices = @transform_3, window_bounds = array<i64: 896, 128>}, {pipeline_mode = #tpu.pipeline_mode<synchronous>, transform_indices = @transform_4, window_bounds = array<i64: 1, 128>}, {pipeline_mode = #tpu.pipeline_mode<synchronous>, transform_indices = @transform_5, window_bounds = array<i64: 128, 128>}, {pipeline_mode = #tpu.pipeline_mode<synchronous>, transform_indices = @transform_6, window_bounds = array<i64: 1, 128>}, {transform_indices = @transform_7, window_bounds = array<i64: 32, 128>}]} {
    %c0 = arith.constant 0 : index
    %c0_0 = arith.constant 0 : index
    %0 = vector.load %arg1[%c0, %c0_0] : memref<32x128xf32, #tpu.memory_space<vmem>>, vector<32x128xf32>
    %cst = arith.constant 0.000000e+00 : f32
    %1 = vector.broadcast %cst : f32 to vector<16x128xf32>
    %c0_1 = arith.constant 0 : index
    %c0_2 = arith.constant 0 : index
    %2 = vector.load %arg9[%c0_1, %c0_2] : memref<80x128xf32, #tpu.memory_space<vmem>>, vector<16x128xf32>
    tpu.vector_store %arg9[%c0_1, %c0_2], %1 {strides = array<i32>} : memref<80x128xf32, #tpu.memory_space<vmem>>, vector<16x128xf32>,
    %cst_3 = arith.constant 0.000000e+00 : f32
    %3 = vector.broadcast %cst_3 : f32 to vector<16x128xf32>
    %c64 = arith.constant 64 : index
    %c0_4 = arith.constant 0 : index
    %4 = vector.load %arg9[%c64, %c0_4] : memref<80x128xf32, #tpu.memory_space<vmem>>, vector<16x128xf32>
    tpu.vector_store %arg9[%c64, %c0_4], %3 {strides = array<i32>} : memref<80x128xf32, #tpu.memory_space<vmem>>, vector<16x128xf32>,
    %cst_5 = arith.constant 0.000000e+00 : f32
    %5 = vector.broadcast %cst_5 : f32 to vector<16x128xf32>
    %c32 = arith.constant 32 : index
    %c0_6 = arith.constant 0 : index
    %6 = vector.load %arg9[%c32, %c0_6] : memref<80x128xf32, #tpu.memory_space<vmem>>, vector<16x128xf32>
    tpu.vector_store %arg9[%c32, %c0_6], %5 {strides = array<i32>} : memref<80x128xf32, #tpu.memory_space<vmem>>, vector<16x128xf32>,
    %7 = vector.extract_strided_slice %0 {offsets = [0, 0], sizes = [16, 128], strides = [1, 1]} : vector<32x128xf32> to vector<16x128xf32>
    %c16 = arith.constant 16 : index
    %c0_7 = arith.constant 0 : index
    %8 = vector.load %arg9[%c16, %c0_7] : memref<80x128xf32, #tpu.memory_space<vmem>>, vector<16x128xf32>
    tpu.vector_store %arg9[%c16, %c0_7], %7 {strides = array<i32>} : memref<80x128xf32, #tpu.memory_space<vmem>>, vector<16x128xf32>,
    %9 = vector.extract_strided_slice %0 {offsets = [16, 0], sizes = [16, 128], strides = [1, 1]} : vector<32x128xf32> to vector<16x128xf32>
    %c48 = arith.constant 48 : index
    %c0_8 = arith.constant 0 : index
    %10 = vector.load %arg9[%c48, %c0_8] : memref<80x128xf32, #tpu.memory_space<vmem>>, vector<16x128xf32>
    tpu.vector_store %arg9[%c48, %c0_8], %9 {strides = array<i32>} : memref<80x128xf32, #tpu.memory_space<vmem>>, vector<16x128xf32>,
    %c14 = arith.constant 14 : index
    %c0_9 = arith.constant 0 : index
    %11 = vector.load %arg9[%c14, %c0_9] : memref<80x128xf32, #tpu.memory_space<vmem>>, vector<48x128xf32>
    %c0_10 = arith.constant 0 : index
    %c0_11 = arith.constant 0 : index
    %12 = vector.load %arg10[%c0_10, %c0_11] : memref<48x896xf32, #tpu.memory_space<vmem>>, vector<48x128xf32>
    tpu.vector_store %arg10[%c0_10, %c0_11], %11 {strides = array<i32>} : memref<48x896xf32, #tpu.memory_space<vmem>>, vector<48x128xf32>,
    %c15 = arith.constant 15 : index
    %c0_12 = arith.constant 0 : index
    %13 = vector.load %arg9[%c15, %c0_12] : memref<80x128xf32, #tpu.memory_space<vmem>>, vector<48x128xf32>
    %c0_13 = arith.constant 0 : index
    %c128 = arith.constant 128 : index
    %14 = vector.load %arg10[%c0_13, %c128] : memref<48x896xf32, #tpu.memory_space<vmem>>, vector<48x128xf32>
    tpu.vector_store %arg10[%c0_13, %c128], %13 {strides = array<i32>} : memref<48x896xf32, #tpu.memory_space<vmem>>, vector<48x128xf32>,
    %c16_14 = arith.constant 16 : index
    %c0_15 = arith.constant 0 : index
    %15 = vector.load %arg9[%c16_14, %c0_15] : memref<80x128xf32, #tpu.memory_space<vmem>>, vector<48x128xf32>
    %c0_16 = arith.constant 0 : index
    %c256 = arith.constant 256 : index
    %16 = vector.load %arg10[%c0_16, %c256] : memref<48x896xf32, #tpu.memory_space<vmem>>, vector<48x128xf32>
    tpu.vector_store %arg10[%c0_16, %c256], %15 {strides = array<i32>} : memref<48x896xf32, #tpu.memory_space<vmem>>, vector<48x128xf32>,
    %c17 = arith.constant 17 : index
    %c0_17 = arith.constant 0 : index
    %17 = vector.load %arg9[%c17, %c0_17] : memref<80x128xf32, #tpu.memory_space<vmem>>, vector<48x128xf32>
    %c0_18 = arith.constant 0 : index
    %c384 = arith.constant 384 : index
    %18 = vector.load %arg10[%c0_18, %c384] : memref<48x896xf32, #tpu.memory_space<vmem>>, vector<48x128xf32>
    tpu.vector_store %arg10[%c0_18, %c384], %17 {strides = array<i32>} : memref<48x896xf32, #tpu.memory_space<vmem>>, vector<48x128xf32>,
    %c18 = arith.constant 18 : index
    %c0_19 = arith.constant 0 : index
    %19 = vector.load %arg9[%c18, %c0_19] : memref<80x128xf32, #tpu.memory_space<vmem>>, vector<48x128xf32>
    %c0_20 = arith.constant 0 : index
    %c512 = arith.constant 512 : index
    %20 = vector.load %arg10[%c0_20, %c512] : memref<48x896xf32, #tpu.memory_space<vmem>>, vector<48x128xf32>
    tpu.vector_store %arg10[%c0_20, %c512], %19 {strides = array<i32>} : memref<48x896xf32, #tpu.memory_space<vmem>>, vector<48x128xf32>,
    %c0_21 = arith.constant 0 : index
    %c0_22 = arith.constant 0 : index
    %21 = vector.load %arg10[%c0_21, %c0_22] : memref<48x896xf32, #tpu.memory_space<vmem>>, vector<48x640xf32>
    %c0_23 = arith.constant 0 : index
    %c0_24 = arith.constant 0 : index
    %22 = vector.load %arg2[%c0_23, %c0_24] : memref<640x128xf32, #tpu.memory_space<vmem>>, vector<640x128xf32>
    %cst_25 = arith.constant dense<0.000000e+00> : vector<48x128xf32>
    %23 = tpu.matmul %21, %22, %cst_25 {dimension_numbers = #tpu.dot_dimension_numbers<[1], [0], [0], [1], [0, 0, 1, 1], [], []>} : vector<48x640xf32>, vector<640x128xf32>, vector<48x128xf32> -> vector<48x128xf32>
    %c0_26 = arith.constant 0 : index
    %c0_27 = arith.constant 0 : index
    %24 = vector.load %arg3[%c0_26, %c0_27] : memref<1x128xf32, #tpu.memory_space<vmem>>, vector<1x128xf32>
    %25 = vector.broadcast %24 : vector<1x128xf32> to vector<48x128xf32>
    %26 = arith.addf %23, %25 : vector<48x128xf32>
    %27 = vector.extract_strided_slice %26 {offsets = [0, 0], sizes = [16, 128], strides = [1, 1]} : vector<48x128xf32> to vector<16x128xf32>
    %c16_28 = arith.constant 16 : index
    %c0_29 = arith.constant 0 : index
    %28 = vector.load %arg9[%c16_28, %c0_29] : memref<80x128xf32, #tpu.memory_space<vmem>>, vector<16x128xf32>
    tpu.vector_store %arg9[%c16_28, %c0_29], %27 {strides = array<i32>} : memref<80x128xf32, #tpu.memory_space<vmem>>, vector<16x128xf32>,
    %29 = vector.extract_strided_slice %26 {offsets = [32, 0], sizes = [16, 128], strides = [1, 1]} : vector<48x128xf32> to vector<16x128xf32>
    %c48_30 = arith.constant 48 : index
    %c0_31 = arith.constant 0 : index
    %30 = vector.load %arg9[%c48_30, %c0_31] : memref<80x128xf32, #tpu.memory_space<vmem>>, vector<16x128xf32>
    tpu.vector_store %arg9[%c48_30, %c0_31], %29 {strides = array<i32>} : memref<80x128xf32, #tpu.memory_space<vmem>>, vector<16x128xf32>,
    %c7 = arith.constant 7 : index
    %c0_32 = arith.constant 0 : index
    %31 = vector.load %arg9[%c7, %c0_32] : memref<80x128xf32, #tpu.memory_space<vmem>>, vector<48x128xf32>
    %c0_33 = arith.constant 0 : index
    %c0_34 = arith.constant 0 : index
    %32 = vector.load %arg10[%c0_33, %c0_34] : memref<48x896xf32, #tpu.memory_space<vmem>>, vector<48x128xf32>
    tpu.vector_store %arg10[%c0_33, %c0_34], %31 {strides = array<i32>} : memref<48x896xf32, #tpu.memory_space<vmem>>, vector<48x128xf32>,
    %c10 = arith.constant 10 : index
    %c0_35 = arith.constant 0 : index
    %33 = vector.load %arg9[%c10, %c0_35] : memref<80x128xf32, #tpu.memory_space<vmem>>, vector<48x128xf32>
    %c0_36 = arith.constant 0 : index
    %c128_37 = arith.constant 128 : index
    %34 = vector.load %arg10[%c0_36, %c128_37] : memref<48x896xf32, #tpu.memory_space<vmem>>, vector<48x128xf32>
    tpu.vector_store %arg10[%c0_36, %c128_37], %33 {strides = array<i32>} : memref<48x896xf32, #tpu.memory_space<vmem>>, vector<48x128xf32>,
    %c13 = arith.constant 13 : index
    %c0_38 = arith.constant 0 : index
    %35 = vector.load %arg9[%c13, %c0_38] : memref<80x128xf32, #tpu.memory_space<vmem>>, vector<48x128xf32>
    %c0_39 = arith.constant 0 : index
    %c256_40 = arith.constant 256 : index
    %36 = vector.load %arg10[%c0_39, %c256_40] : memref<48x896xf32, #tpu.memory_space<vmem>>, vector<48x128xf32>
    tpu.vector_store %arg10[%c0_39, %c256_40], %35 {strides = array<i32>} : memref<48x896xf32, #tpu.memory_space<vmem>>, vector<48x128xf32>,
    %c16_41 = arith.constant 16 : index
    %c0_42 = arith.constant 0 : index
    %37 = vector.load %arg9[%c16_41, %c0_42] : memref<80x128xf32, #tpu.memory_space<vmem>>, vector<48x128xf32>
    %c0_43 = arith.constant 0 : index
    %c384_44 = arith.constant 384 : index
    %38 = vector.load %arg10[%c0_43, %c384_44] : memref<48x896xf32, #tpu.memory_space<vmem>>, vector<48x128xf32>
    tpu.vector_store %arg10[%c0_43, %c384_44], %37 {strides = array<i32>} : memref<48x896xf32, #tpu.memory_space<vmem>>, vector<48x128xf32>,
    %c19 = arith.constant 19 : index
    %c0_45 = arith.constant 0 : index
    %39 = vector.load %arg9[%c19, %c0_45] : memref<80x128xf32, #tpu.memory_space<vmem>>, vector<48x128xf32>
    %c0_46 = arith.constant 0 : index
    %c512_47 = arith.constant 512 : index
    %40 = vector.load %arg10[%c0_46, %c512_47] : memref<48x896xf32, #tpu.memory_space<vmem>>, vector<48x128xf32>
    tpu.vector_store %arg10[%c0_46, %c512_47], %39 {strides = array<i32>} : memref<48x896xf32, #tpu.memory_space<vmem>>, vector<48x128xf32>,
    %c22 = arith.constant 22 : index
    %c0_48 = arith.constant 0 : index
    %41 = vector.load %arg9[%c22, %c0_48] : memref<80x128xf32, #tpu.memory_space<vmem>>, vector<48x128xf32>
    %c0_49 = arith.constant 0 : index
    %c640 = arith.constant 640 : index
    %42 = vector.load %arg10[%c0_49, %c640] : memref<48x896xf32, #tpu.memory_space<vmem>>, vector<48x128xf32>
    tpu.vector_store %arg10[%c0_49, %c640], %41 {strides = array<i32>} : memref<48x896xf32, #tpu.memory_space<vmem>>, vector<48x128xf32>,
    %c25 = arith.constant 25 : index
    %c0_50 = arith.constant 0 : index
    %43 = vector.load %arg9[%c25, %c0_50] : memref<80x128xf32, #tpu.memory_space<vmem>>, vector<48x128xf32>
    %c0_51 = arith.constant 0 : index
    %c768 = arith.constant 768 : index
    %44 = vector.load %arg10[%c0_51, %c768] : memref<48x896xf32, #tpu.memory_space<vmem>>, vector<48x128xf32>
    tpu.vector_store %arg10[%c0_51, %c768], %43 {strides = array<i32>} : memref<48x896xf32, #tpu.memory_space<vmem>>, vector<48x128xf32>,
    %c0_52 = arith.constant 0 : index
    %c0_53 = arith.constant 0 : index
    %45 = vector.load %arg10[%c0_52, %c0_53] : memref<48x896xf32, #tpu.memory_space<vmem>>, vector<48x896xf32>
    %c0_54 = arith.constant 0 : index
    %c0_55 = arith.constant 0 : index
    %46 = vector.load %arg4[%c0_54, %c0_55] : memref<896x128xf32, #tpu.memory_space<vmem>>, vector<896x128xf32>
    %cst_56 = arith.constant dense<0.000000e+00> : vector<48x128xf32>
    %47 = tpu.matmul %45, %46, %cst_56 {dimension_numbers = #tpu.dot_dimension_numbers<[1], [0], [0], [1], [0, 0, 1, 1], [], []>} : vector<48x896xf32>, vector<896x128xf32>, vector<48x128xf32> -> vector<48x128xf32>
    %c0_57 = arith.constant 0 : index
    %c0_58 = arith.constant 0 : index
    %48 = vector.load %arg5[%c0_57, %c0_58] : memref<1x128xf32, #tpu.memory_space<vmem>>, vector<1x128xf32>
    %49 = vector.broadcast %48 : vector<1x128xf32> to vector<48x128xf32>
    %50 = arith.addf %47, %49 : vector<48x128xf32>
    %c0_59 = arith.constant 0 : index
    %c0_60 = arith.constant 0 : index
    %51 = vector.load %arg6[%c0_59, %c0_60] : memref<128x128xf32, #tpu.memory_space<vmem>>, vector<128x128xf32>
    %cst_61 = arith.constant dense<0.000000e+00> : vector<32x128xf32>
    %52 = tpu.matmul %0, %51, %cst_61 {dimension_numbers = #tpu.dot_dimension_numbers<[1], [0], [0], [1], [0, 0, 1, 1], [], []>} : vector<32x128xf32>, vector<128x128xf32>, vector<32x128xf32> -> vector<32x128xf32>
    %c0_62 = arith.constant 0 : index
    %c0_63 = arith.constant 0 : index
    %53 = vector.load %arg7[%c0_62, %c0_63] : memref<1x128xf32, #tpu.memory_space<vmem>>, vector<1x128xf32>
    %54 = vector.broadcast %53 : vector<1x128xf32> to vector<32x128xf32>
    %55 = arith.addf %52, %54 : vector<32x128xf32>
    %56 = vector.extract_strided_slice %0 {offsets = [0, 0], sizes = [16, 128], strides = [1, 1]} : vector<32x128xf32> to vector<16x128xf32>
    %57 = vector.extract_strided_slice %50 {offsets = [0, 0], sizes = [16, 128], strides = [1, 1]} : vector<48x128xf32> to vector<16x128xf32>
    %58 = arith.mulf %56, %57 : vector<16x128xf32>
    %59 = vector.extract_strided_slice %55 {offsets = [0, 0], sizes = [16, 128], strides = [1, 1]} : vector<32x128xf32> to vector<16x128xf32>
    %60 = arith.mulf %58, %59 : vector<16x128xf32>
    %61 = arith.addf %60, %56 : vector<16x128xf32>
    %c0_64 = arith.constant 0 : index
    %c0_65 = arith.constant 0 : index
    %62 = vector.load %arg8[%c0_64, %c0_65] : memref<32x128xf32, #tpu.memory_space<vmem>>, vector<16x128xf32>
    tpu.vector_store %arg8[%c0_64, %c0_65], %61 {strides = array<i32>} : memref<32x128xf32, #tpu.memory_space<vmem>>, vector<16x128xf32>,
    %63 = vector.extract_strided_slice %0 {offsets = [16, 0], sizes = [16, 128], strides = [1, 1]} : vector<32x128xf32> to vector<16x128xf32>
    %64 = vector.extract_strided_slice %50 {offsets = [32, 0], sizes = [16, 128], strides = [1, 1]} : vector<48x128xf32> to vector<16x128xf32>
    %65 = arith.mulf %63, %64 : vector<16x128xf32>
    %66 = vector.extract_strided_slice %55 {offsets = [16, 0], sizes = [16, 128], strides = [1, 1]} : vector<32x128xf32> to vector<16x128xf32>
    %67 = arith.mulf %65, %66 : vector<16x128xf32>
    %68 = arith.addf %67, %63 : vector<16x128xf32>
    %c16_66 = arith.constant 16 : index
    %c0_67 = arith.constant 0 : index
    %69 = vector.load %arg8[%c16_66, %c0_67] : memref<32x128xf32, #tpu.memory_space<vmem>>, vector<16x128xf32>
    tpu.vector_store %arg8[%c16_66, %c0_67], %68 {strides = array<i32>} : memref<32x128xf32, #tpu.memory_space<vmem>>, vector<16x128xf32>,
    return
  }
  func.func @transform_0(%arg0: i32) -> (i32, i32) {
    %c0_i32 = arith.constant 0 : i32
    %c0_i32_0 = arith.constant 0 : i32
    return %arg0, %c0_i32 : i32, i32
  }
  func.func @transform_1(%arg0: i32) -> (i32, i32) {
    %c0_i32 = arith.constant 0 : i32
    %c0_i32_0 = arith.constant 0 : i32
    %c0_i32_1 = arith.constant 0 : i32
    return %c0_i32, %c0_i32_0 : i32, i32
  }
  func.func @transform_2(%arg0: i32) -> (i32, i32) {
    %c0_i32 = arith.constant 0 : i32
    %c0_i32_0 = arith.constant 0 : i32
    %c0_i32_1 = arith.constant 0 : i32
    return %c0_i32, %c0_i32_0 : i32, i32
  }
  func.func @transform_3(%arg0: i32) -> (i32, i32) {
    %c0_i32 = arith.constant 0 : i32
    %c0_i32_0 = arith.constant 0 : i32
    %c0_i32_1 = arith.constant 0 : i32
    return %c0_i32, %c0_i32_0 : i32, i32
  }
  func.func @transform_4(%arg0: i32) -> (i32, i32) {
    %c0_i32 = arith.constant 0 : i32
    %c0_i32_0 = arith.constant 0 : i32
    %c0_i32_1 = arith.constant 0 : i32
    return %c0_i32, %c0_i32_0 : i32, i32
  }
  func.func @transform_5(%arg0: i32) -> (i32, i32) {
    %c0_i32 = arith.constant 0 : i32
    %c0_i32_0 = arith.constant 0 : i32
    %c0_i32_1 = arith.constant 0 : i32
    return %c0_i32, %c0_i32_0 : i32, i32
  }
  func.func @transform_6(%arg0: i32) -> (i32, i32) {
    %c0_i32 = arith.constant 0 : i32
    %c0_i32_0 = arith.constant 0 : i32
    %c0_i32_1 = arith.constant 0 : i32
    return %c0_i32, %c0_i32_0 : i32, i32
  }
  func.func @transform_7(%arg0: i32) -> (i32, i32) {
    %c0_i32 = arith.constant 0 : i32
    %c0_i32_0 = arith.constant 0 : i32
    return %arg0, %c0_i32 : i32, i32
  }
}

</mosaic_0001>

<bundles_post_ra>
// kernel: tpu_custom_call.1
= control target key start
LH: loop header
LB: loop body
LE: loop exit
PB: predicated region body
PF: predicated region fallthrough
CT: control target
= control target key end

     0   :  { %s2115_s0 = inlined_call_operand.hbm [shape: f32[64,128], index: 0, kind: input, shape index: {}]   ;;  %s2116_s1 = inlined_call_operand.hbm [shape: f32[640,128], index: 1, kind: input, shape index: {}]   ;;  %s2117_s2 = inlined_call_operand.vmem [shape: f32[1,128], index: 2, kind: input, shape index: {}]   ;;  %s2118_s3 = inlined_call_operand.hbm [shape: f32[896,128], index: 3, kind: input, shape index: {}]   ;;  %s2119_s4 = inlined_call_operand.vmem [shape: f32[1,128], index: 4, kind: input, shape index: {}]   ;;  %s2120_s5 = inlined_call_operand.hbm [shape: f32[128,128], index: 5, kind: input, shape index: {}]   ;;  %s2121_s6 = inlined_call_operand.vmem [shape: f32[1,128], index: 6, kind: input, shape index: {}]   ;;  %s2122_s7 = inlined_call_operand.hbm [shape: f32[64,128], index: 7, kind: output, shape index: {}]  }
   0x1   :  { %2125 = sst [smem:[#allocation17_spill]] %s2116_s1 }
   0x2   :  { %12 = vsyncpa [#allocation5], 0 }
   0x3   :  { %14 = vsyncpa [#allocation5 + $0x1], 0 }
   0x4   :  { %15 = vsyncpa [#allocation8], 0 }
   0x5   :  { %16 = vsyncpa [#allocation11], 0 }
   0x6   :  { %17 = vsyncpa [#allocation6], 0 }
   0x7   :  { %19 = vsyncpa [#allocation6 + $0x1], 0  ;;  %s1764_s24 = smov 0   ;;  %s1766_s25 = smov 0  }
   0x8   :  { %s1768_s26 = smov 0   ;;  %s1770_s27 = smov 0  }
   0x9 LB: > { %s1785_s28 = sadd.s32 4294967295, %s1714_s27   ;;  %s1364_s29 = sadd.s32 4294967294, %s1714_s27   ;;  %s1714_s27 = sphi %s1770_s27, %s2139_s27   ;;  %s1710_s26 = sphi %s1768_s26, %s2138_s26   ;;  %s1706_s25 = sphi %s1766_s25, %s2137_s25   ;;  %s1702_s24 = sphi %s1764_s24, %s2136_s24  }
   0xa   : > { %p45_p0 = scmp.ne.s32.totalorder %s1706_s25, %s1702_s24  ;;  %p46_p1 = scmp.eq.s32.totalorder %s1785_s28, 0 }
   0xb   : > { %p195_p2 = scmp.eq.s32.totalorder %s1785_s28, 1  ;;  %p201_p3 = scmp.eq.s32.totalorder %s1364_s29, 1 }
   0xc   : > { %p1794_p4 = por %p46_p1, %p45_p0  ;;  %p1365_p5 = scmp.ge.s32.totalorder %s1714_s27, 1 }
   0xd   : > { %p1799_p6 = por %p201_p3, %p45_p0  ;;  %p208_p7 = scmp.lt.s32.totalorder %s1714_s27, 3 }
   0xe   : > { %s2128_s1 = sld [smem:[#allocation17_spill]]  ;;  %s1716_s13 = smov [#allocation7]  }
   0xf   : > { %p1807_p8 = pnand %p1365_p5, %p208_p7  ;;  %s221_s14 = sshll.u32 %s1716_s13, 4  ;;  %s222_s14 = int_to_ptr.vmem [resolvable:$true] %s221_s14 }
  0x10   : > { %s236_s18 = sshll.u32 %s2118_s3, 4  ;;  %s2123_s19 = smov 128   ;;  %s237_s18 = int_to_ptr.hbm [resolvable:$true] %s236_s18 }
  0x11   : > { %p1450_p9 = pneg %p1807_p8  ;;  %s2124_s20 = smov 8  }
  0x12   : > { %s1719_s21 = smov [#allocation9]   ;;  %s253_s9 = sshll.u32 %s2120_s5, 4  ;;  %s254_s9 = int_to_ptr.hbm [resolvable:$true] %s253_s9 }
  0x13   : > { %p1815_p10 = pnand %p1450_p9, %p46_p1  ;;  %s238_s22 = sshll.u32 %s1719_s21, 4  ;;  %s239_s22 = int_to_ptr.vmem [resolvable:$true] %s238_s22 }
  0x14   : > { %s219_s11 = sshll.u32 %s2128_s1, 4  ;;  %s1720_s10 = smov [#allocation10]   ;;  %s220_s11 = int_to_ptr.hbm [resolvable:$true] %s219_s11 }
  0x15   : > { %1453 = dma.hbm_to_vmem [thread:$0]  (!%p1815_p10), %s220_s11, 10240, %s222_s14, [#allocation8], %s2123_s19, %s2123_s19, %s2124_s20  }
  0x16   : > { %1456 = dma.hbm_to_vmem [thread:$0]  (!%p1815_p10), %s237_s18, 14336, %s239_s22, [#allocation8], %s2123_s19, %s2123_s19, %s2124_s20  }
  0x17   : > { %s255_s11 = sshll.u32 %s1720_s10, 4  ;;  %s1837_s13 = sadd.s32 1, %s1714_s27   ;;  %s256_s11 = int_to_ptr.vmem [resolvable:$true] %s255_s11 }
  0x18   : > { %1459 = dma.hbm_to_vmem [thread:$0]  (!%p1815_p10), %s254_s9, 2048, %s256_s11, [#allocation11], %s2123_s19, %s2123_s19, %s2124_s20  }
  0x19   : > { %s29_s14 = ssub.s32 %s1714_s27, %s1837_s13  ;;  %s32_s16 = sadd.s32 1, %s1710_s26 }
  0x1a   : > { %p30_p12 = scmp.eq.s32.totalorder %s29_s14, 0  ;;  %p39_p13 = scmp.ne.s32.totalorder %s1710_s26, %s1706_s25 }
  0x1b   : > { %p40_p0 = scmp.eq.s32.totalorder %s1714_s27, 0  ;;  %p1471_p5 = scmp.lt.s32.totalorder %s1714_s27, 2 }
  0x1c   : > { %s1851_s17 = scalar_select %p30_p12, %s1710_s26, %s32_s16  }
  0x1d   : > { %p1855_p3 = por %p195_p2, %p39_p13  ;;  %s272_s21 = sand.u32 1, %s1710_s26  }
  0x1e   : > { %s1384_s15 = sshll.u32 %s1714_s27, 5  ;;  %p41_p7 = por %p40_p0, %p39_p13 }
  0x1f   : > { %s1370_s22 = sshll.u32 %s272_s21, 5  ;;  %s281_s9 = scalar_lea.hbm %s2115_s0, %s1384_s15 }
  0x20   : > { %s282_s10 = sshll.u32 %s281_s9, 4  ;;  %s276_s11 = scalar_lea.vmem [#allocation4], %s1370_s22  ;;  %s283_s10 = int_to_ptr.hbm [resolvable:$true] %s282_s10 }
  0x21   : > { %s284_s14 = sshll.u32 %s276_s11, 4  ;;  %p1865_p9 = pnand %p1471_p5, %p41_p7  ;;  %s285_s14 = int_to_ptr.vmem [resolvable:$true] %s284_s14 }
  0x22   : > { %s273_s19 = scalar_lea.sflag [#allocation5], %s272_s21  ;;  %s1610_s20 = sshra.s32 %s283_s10, 4  ;;  %s1611_s20 = int_to_ptr.hbm [resolvable:$true] %s1610_s20 }
  0x23   : > { %s1612_s1 = scalar_lea.hbm %s1611_s20, 32  ;;  %p1614_p10 = pneg %p1865_p9 }
  0x24   : > { %p1613_p2 = scmp.ne.s32.totalorder %s1611_s20, %s1612_s1  ;;  %s1617_s22 = scalar_lea.hbm %s2115_s0, 64 }
  0x25   : > { %p1618_p0 = scmp.lt.s32.totalorder %s1611_s20, %s2115_s0  ;;  %p1619_p5 = scmp.lt.s32.totalorder %s1617_s22, %s1612_s1 }
  0x26   : > { %p1615_p12 = pnand %p1614_p10, %p1613_p2 }
  0x27   : > { %p1620_p7 = por %p1619_p5, %p1618_p0 }
  0x28   : > { %p1616_p13 = pneg %p1615_p12 }
  0x2a   : > { %p1621_p11 = pnand %p1620_p7, %p1616_p13 }
  0x2c   : > { %1624 = shalt.err (!%p1621_p11)
}
  0x2d   : > { %s2133_s21 = smov 8   ;;  %s2134_s11 = smov 128  }
  0x2e   : > { %1463 = dma.hbm_to_vmem [thread:$0]  (!%p1865_p9), %s283_s10, 512, %s285_s14, %s273_s19, %s2134_s11, %s2134_s11, %s2133_s21  }
  0x2f   : > { %296 = sbr.rel (%p1807_p8) target bundleno = 514 (0x202), region = 48  ;;  %s1885_s15 = sand.u32 (!%p1807_p8), 1, %s1706_s25  }
  0x30   : > { %s1374_s1 = sshll.u32 (!%p1807_p8), %s1885_s15, 5  ;;  %s299_s20 = scalar_lea.sflag (!%p1807_p8), [#allocation5], %s1885_s15 }
  0x31   : > { %s1891_s23 = scalar_lea.vmem (!%p1807_p8), [#allocation4], %s1374_s1 }
  0x34   : > { %1685 = dma.done.wait (%p1794_p4), %s299_s20, 512  }
  0x35   : > { %1687 = vsyncadd (%p1794_p4), %s299_s20, 4294966784 }
  0x36   : > { %1689 = dma.done.wait (%p46_p1), [#allocation8], 24576  }
  0x37   : > { %1691 = vsyncadd (%p46_p1), [#allocation8], 4294942720 }
  0x38   : > { %1693 = dma.done.wait (%p46_p1), [#allocation11], 2048  }
  0x39   : > { %1695 = vsyncadd (%p46_p1), [#allocation11], 4294965248  ;;  %v1721_v0 = vmov 0.0   ;;  %v470_v1 = vld [vmem:[#allocation7 + $0x78] sm:$0xff]  ;;  %v469_v3 = vld [vmem:[#allocation7 + $0x70] sm:$0xff]  ;;  %s2069_s22 = scalar_lea.vmem [#allocation12], %s1374_s1 }
  0x3a   : > { %356 = vst [vmem:[#allocation2 + $0x8] sm:$0xff] %v1721_v0  ;;  %v502_v2 = vld [vmem:[#allocation7 + $0x178] sm:$0xff]  ;;  %539 = vmatpush.msra.mxu0 %v470_v1  ;;  %v501_v5 = vld [vmem:[#allocation7 + $0x170] sm:$0xff]  ;;  %v468_v7 = vld [vmem:[#allocation7 + $0x68] sm:$0xff]  ;;  %s1385_s29 = sshll.u32 %s1785_s28, 5  ;;  %s1259_s1 = sshll.u32 %s2069_s22, 4  ;;  %s1260_s1 = int_to_ptr.vmem [resolvable:$true] %s1259_s1 }
  0x3b   : > { %355 = vst [vmem:[#allocation2] sm:$0xff] %v1721_v0  ;;  %605 = vmatpush.msra.mxu2 %v502_v2  ;;  %v486_v4 = vld [vmem:[#allocation7 + $0xf8] sm:$0xff]  ;;  %v485_v8 = vld [vmem:[#allocation7 + $0xf0] sm:$0xff]  ;;  %v500_v9 = vld [vmem:[#allocation7 + $0x168] sm:$0xff]  ;;  %s1258_s11 = scalar_lea.hbm %s2122_s7, %s1385_s29  ;;  %s1247_s20 = scalar_lea.sflag [#allocation6], %s1885_s15 }
  0x3c   : > { %357 = vst [vmem:[#allocation2 + $0x40] sm:$0xff] %v1721_v0  ;;  %v518_v6 = vld [vmem:[#allocation7 + $0x1f8] sm:$0xff]  ;;  %572 = vmatpush.msra.mxu1 %v486_v4  ;;  %540 = vmatpush.msra.mxu0 %v469_v3  ;;  %v517_v10 = vld [vmem:[#allocation7 + $0x1f0] sm:$0xff]  ;;  %v484_v11 = vld [vmem:[#allocation7 + $0xe8] sm:$0xff]  ;;  %s1261_s28 = sshll.u32 %s1258_s11, 4  ;;  %s1660_s10 = scalar_lea.hbm %s2122_s7, 64  ;;  %s1262_s28 = int_to_ptr.hbm [resolvable:$true] %s1261_s28 }
  0x3d   : > { %358 = vst [vmem:[#allocation2 + $0x48] sm:$0xff] %v1721_v0  ;;  %638 = vmatpush.msra.mxu3 %v518_v6  ;;  %606 = vmatpush.msra.mxu2 %v501_v5  ;;  %v467_v12 = vld [vmem:[#allocation7 + $0x60] sm:$0xff]  ;;  %v516_v14 = vld [vmem:[#allocation7 + $0x1e8] sm:$0xff]  ;;  %v466_v17 = vld [vmem:[#allocation7 + $0x58] sm:$0xff] }
  0x3e   : > { %359 = vst [vmem:[#allocation2 + $0x20] sm:$0xff] %v1721_v0  ;;  %573 = vmatpush.msra.mxu1 %v485_v8  ;;  %v499_v13 = vld [vmem:[#allocation7 + $0x160] sm:$0xff]  ;;  %541 = vmatpush.msra.mxu0 %v468_v7  ;;  %v498_v18 = vld [vmem:[#allocation7 + $0x158] sm:$0xff]  ;;  %v465_v21 = vld [vmem:[#allocation7 + $0x50] sm:$0xff] }
  0x3f   : > { %360 = vst [vmem:[#allocation2 + $0x28] sm:$0xff] %v1721_v0  ;;  %639 = vmatpush.msra.mxu3 %v517_v10  ;;  %607 = vmatpush.msra.mxu2 %v500_v9  ;;  %v483_v15 = vld [vmem:[#allocation7 + $0xe0] sm:$0xff]  ;;  %v482_v19 = vld [vmem:[#allocation7 + $0xd8] sm:$0xff]  ;;  %v497_v22 = vld [vmem:[#allocation7 + $0x150] sm:$0xff] }
  0x40   : > { %v515_v16 = vld [vmem:[#allocation7 + $0x1e0] sm:$0xff]  ;;  %574 = vmatpush.msra.mxu1 %v484_v11  ;;  %542 = vmatpush.msra.mxu0 %v467_v12  ;;  %v514_v20 = vld [vmem:[#allocation7 + $0x1d8] sm:$0xff]  ;;  %v481_v23 = vld [vmem:[#allocation7 + $0xd0] sm:$0xff] }
  0x41   : > { %640 = vmatpush.msra.mxu3 %v516_v14  ;;  %608 = vmatpush.msra.mxu2 %v499_v13  ;;  %v513_v24 = vld [vmem:[#allocation7 + $0x1d0] sm:$0xff]  ;;  %v464_v25 = vld [vmem:[#allocation7 + $0x48] sm:$0xff]  ;;  %v463_v29 = vld [vmem:[#allocation7 + $0x40] sm:$0xff] }
  0x42   : > { %575 = vmatpush.msra.mxu1 %v483_v15  ;;  %543 = vmatpush.msra.mxu0 %v466_v17  ;;  %v496_v26 = vld [vmem:[#allocation7 + $0x148] sm:$0xff]  ;;  %v495_v30 = vld [vmem:[#allocation7 + $0x140] sm:$0xff]  ;;  %v462_v33 = vld [vmem:[#allocation7 + $0x38] sm:$0xff] }
  0x43   : > { %641 = vmatpush.msra.mxu3 %v515_v16  ;;  %609 = vmatpush.msra.mxu2 %v498_v18  ;;  %v480_v27 = vld [vmem:[#allocation7 + $0xc8] sm:$0xff]  ;;  %v479_v31 = vld [vmem:[#allocation7 + $0xc0] sm:$0xff]  ;;  %v494_v34 = vld [vmem:[#allocation7 + $0x138] sm:$0xff] }
  0x44   : > { %576 = vmatpush.msra.mxu1 %v482_v19  ;;  %544 = vmatpush.msra.mxu0 %v465_v21  ;;  %v512_v28 = vld [vmem:[#allocation7 + $0x1c8] sm:$0xff]  ;;  %v511_v32 = vld [vmem:[#allocation7 + $0x1c0] sm:$0xff]  ;;  %v478_v35 = vld [vmem:[#allocation7 + $0xb8] sm:$0xff] }
  0x45   : > { %642 = vmatpush.msra.mxu3 %v514_v20  ;;  %610 = vmatpush.msra.mxu2 %v497_v22  ;;  %v510_v36 = vld [vmem:[#allocation7 + $0x1b8] sm:$0xff]  ;;  %v461_v37 = vld [vmem:[#allocation7 + $0x30] sm:$0xff]  ;;  %v460_v41 = vld [vmem:[#allocation7 + $0x28] sm:$0xff] }
  0x46   : > { %577 = vmatpush.msra.mxu1 %v481_v23  ;;  %545 = vmatpush.msra.mxu0 %v464_v25  ;;  %v493_v38 = vld [vmem:[#allocation7 + $0x130] sm:$0xff]  ;;  %v492_v42 = vld [vmem:[#allocation7 + $0x128] sm:$0xff]  ;;  %v459_v45 = vld [vmem:[#allocation7 + $0x20] sm:$0xff] }
  0x47   : > { %643 = vmatpush.msra.mxu3 %v513_v24  ;;  %611 = vmatpush.msra.mxu2 %v496_v26  ;;  %v477_v39 = vld [vmem:[#allocation7 + $0xb0] sm:$0xff]  ;;  %v476_v43 = vld [vmem:[#allocation7 + $0xa8] sm:$0xff]  ;;  %v491_v46 = vld [vmem:[#allocation7 + $0x120] sm:$0xff] }
  0x48   : > { %578 = vmatpush.msra.mxu1 %v480_v27  ;;  %546 = vmatpush.msra.mxu0 %v463_v29  ;;  %v509_v40 = vld [vmem:[#allocation7 + $0x1b0] sm:$0xff]  ;;  %v508_v44 = vld [vmem:[#allocation7 + $0x1a8] sm:$0xff]  ;;  %v1912_v47 = vld [vmem:[%s1891_s23] sm:$0xff] }
  0x49   : > { %644 = vmatpush.msra.mxu3 %v512_v28  ;;  %612 = vmatpush.msra.mxu2 %v495_v30  ;;  %v475_v48 = vld [vmem:[#allocation7 + $0xa0] sm:$0xff]  ;;  %361 = vst [vmem:[#allocation2 + $0x10] sm:$0xff] %v1912_v47  ;;  %v458_v50 = vld [vmem:[#allocation7 + $0x18] sm:$0xff]  ;;  %v1916_v52 = vld [vmem:[%s1891_s23 + $0x8] sm:$0xff] }
  0x4a   : > { %579 = vmatpush.msra.mxu1 %v479_v31  ;;  %547 = vmatpush.msra.mxu0 %v462_v33  ;;  %v507_v49 = vld [vmem:[#allocation7 + $0x1a0] sm:$0xff]  ;;  %v490_v51 = vld [vmem:[#allocation7 + $0x118] sm:$0xff]  ;;  %362 = vst [vmem:[#allocation2 + $0x18] sm:$0xff] %v1916_v52  ;;  %v457_v55 = vld [vmem:[#allocation7 + $0x10] sm:$0xff] }
  0x4b   : > { %645 = vmatpush.msra.mxu3 %v511_v32  ;;  %613 = vmatpush.msra.mxu2 %v494_v34  ;;  %v474_v53 = vld [vmem:[#allocation7 + $0x98] sm:$0xff]  ;;  %v489_v56 = vld [vmem:[#allocation7 + $0x110] sm:$0xff]  ;;  %v456_v57 = vld [vmem:[#allocation7 + $0x8] sm:$0xff] }
  0x4c   : > { %580 = vmatpush.msra.mxu1 %v478_v35  ;;  %548 = vmatpush.msra.mxu0 %v461_v37  ;;  %v506_v54 = vld [vmem:[#allocation7 + $0x198] sm:$0xff]  ;;  %v473_v58 = vld [vmem:[#allocation7 + $0x90] sm:$0xff]  ;;  %v488_v59 = vld [vmem:[#allocation7 + $0x108] sm:$0xff] }
  0x4d   : > { %646 = vmatpush.msra.mxu3 %v510_v36  ;;  %614 = vmatpush.msra.mxu2 %v493_v38  ;;  %v505_v60 = vld [vmem:[#allocation7 + $0x190] sm:$0xff]  ;;  %v1923_v62 = vld [vmem:[%s1891_s23 + $0x18] sm:$0xff]  ;;  %v472_v63 = vld [vmem:[#allocation7 + $0x88] sm:$0xff] }
  0x4e   : > { %581 = vmatpush.msra.mxu1 %v477_v39  ;;  %549 = vmatpush.msra.mxu0 %v460_v41  ;;  %v1920_v61 = vld [vmem:[%s1891_s23 + $0x10] sm:$0xff]  ;;  %v504_v1 = vld [vmem:[#allocation7 + $0x188] sm:$0xff]  ;;  %v455_v2 = vld [vmem:[#allocation7] sm:$0xff]  ;;  %364 = vst [vmem:[#allocation2 + $0x38] sm:$0xff] %v1923_v62  ;;  %s1654_s23 = sshra.s32 %s1262_s28, 4  ;;  %s1655_s23 = int_to_ptr.hbm [resolvable:$true] %s1654_s23 }
  0x4f   : > { %647 = vmatpush.msra.mxu3 %v509_v40  ;;  %615 = vmatpush.msra.mxu2 %v492_v42  ;;  %363 = vst [vmem:[#allocation2 + $0x30] sm:$0xff] %v1920_v61  ;;  %v487_v3 = vld [vmem:[#allocation7 + $0x100] sm:$0xff]  ;;  %v534_v5 = vld [vmem:[#allocation7 + $0x278] sm:$0xff]  ;;  %v533_v10 = vld [vmem:[#allocation7 + $0x270] sm:$0xff]  ;;  %s1656_s30 = scalar_lea.hbm %s1655_s23, 32  ;;  %p1661_p11 = scmp.lt.s32.totalorder %s1655_s23, %s2122_s7 }
  0x50   : > { %582 = vmatpush.msra.mxu1 %v476_v43  ;;  %550 = vmatpush.msra.mxu0 %v459_v45  ;;  %v365_v4 = vld [vmem:[#allocation2 + $0xe] sm:$0xff]  ;;  %v532_v11 = vld [vmem:[#allocation7 + $0x268] sm:$0xff]  ;;  %v529_v17 = vld [vmem:[#allocation7 + $0x250] sm:$0xff]  ;;  %p1657_p1 = scmp.ne.s32.totalorder %s1655_s23, %s1656_s30  ;;  %p1662_p9 = scmp.lt.s32.totalorder %s1660_s10, %s1656_s30 }
  0x51   : > { %648 = vmatpush.msra.mxu3 %v508_v44  ;;  %616 = vmatpush.msra.mxu2 %v491_v46  ;;  %v471_v6 = vld [vmem:[#allocation7 + $0x80] sm:$0xff]  ;;  %v530_v14 = vld [vmem:[#allocation7 + $0x258] sm:$0xff]  ;;  %v402_v16 = vld [vmem:[#allocation2 + $0x19] sm:$0xff] }
  0x52   : > { %583 = vmatpush.msra.mxu1 %v475_v48  ;;  %551 = vmatpush.msra.mxu0 %v458_v50  ;;  %v503_v7 = vld [vmem:[#allocation7 + $0x180] sm:$0xff]  ;;  %v528_v18 = vld [vmem:[#allocation7 + $0x248] sm:$0xff]  ;;  %v526_v21 = vld [vmem:[#allocation7 + $0x238] sm:$0xff]  ;;  %p1658_p4 = pnand %p1657_p1, %p1855_p3  ;;  %p1663_p2 = por %p1662_p9, %p1661_p11 }
  0x53   : > { %649 = vmatpush.msra.mxu3 %v507_v49  ;;  %617 = vmatpush.msra.mxu2 %v490_v51  ;;  %v377_v8 = vld [vmem:[#allocation2 + $0xf] sm:$0xff]  ;;  %v378_v15 = vld [vmem:[#allocation2 + $0x17] sm:$0xff]  ;;  %v379_v22 = vld [vmem:[#allocation2 + $0x1f] sm:$0xff] }
  0x54   : > { %584 = vmatpush.msra.mxu1 %v474_v53  ;;  %552 = vmatpush.msra.mxu0 %v457_v55  ;;  %v401_v9 = vld [vmem:[#allocation2 + $0x11] sm:$0xff]  ;;  %v367_v20 = vld [vmem:[#allocation2 + $0x1e] sm:$0xff]  ;;  %v1933_v27 = vld [vmem:[#allocation2 + $0x26] sm:$0xff]  ;;  %p1659_p8 = pneg %p1658_p4 }
  0x55   : > { %650 = vmatpush.msra.mxu3 %v506_v54  ;;  %618 = vmatpush.msra.mxu2 %v489_v56  ;;  %v531_v12 = vld [vmem:[#allocation7 + $0x260] sm:$0xff]  ;;  %v1930_v23 = vld [vmem:[#allocation2 + $0x21] sm:$0xff]  ;;  %v524_v25 = vld [vmem:[#allocation7 + $0x228] sm:$0xff] }
  0x56   : > { %585 = vmatpush.msra.mxu1 %v473_v58  ;;  %553 = vmatpush.msra.mxu0 %v456_v57  ;;  %v366_v13 = vld [vmem:[#allocation2 + $0x16] sm:$0xff]  ;;  %v525_v24 = vld [vmem:[#allocation7 + $0x230] sm:$0xff]  ;;  %v522_v28 = vld [vmem:[#allocation7 + $0x218] sm:$0xff]  ;;  %p1664_p10 = pnand %p1663_p2, %p1659_p8 }
  0x57   : > { %651 = vmatpush.msra.mxu3 %v505_v60  ;;  %619 = vmatpush.msra.mxu2 %v488_v59  ;;  %v527_v19 = vld [vmem:[#allocation7 + $0x240] sm:$0xff]  ;;  %v1935_v29 = vld [vmem:[#allocation2 + $0x27] sm:$0xff]  ;;  %v520_v32 = vld [vmem:[#allocation7 + $0x208] sm:$0xff] }
  0x58   : > { %586 = vmatpush.msra.mxu1 %v472_v63  ;;  %554 = vmatpush.msra.mxu0 %v455_v2  ;;  %v523_v26 = vld [vmem:[#allocation7 + $0x220] sm:$0xff]  ;;  %v521_v31 = vld [vmem:[#allocation7 + $0x210] sm:$0xff]  ;;  %v865_v46 = vld [vmem:[#allocation9 + $0xf8] sm:$0xff] }
  0x59   : > { %652 = vmatpush.msra.mxu3 %v504_v1  ;;  %620 = vmatpush.msra.mxu2 %v487_v3  ;;  %v404_v30 = vld [vmem:[#allocation2 + $0x29] sm:$0xff]  ;;  %v405_v36 = vld [vmem:[#allocation2 + $0x31] sm:$0xff]  ;;  %v406_v39 = vld [vmem:[#allocation2 + $0x39] sm:$0xff] }
  0x5a   : > { %555 = vmatmul.f32.vlgmr.msra.gmra.mxu0 %v365_v4  ;;  %621 = vmatmul.f32.vlgmr.msra.gmra.mxu2 %v1912_v47  ;;  %v519_v33 = vld [vmem:[#allocation7 + $0x200] sm:$0xff]  ;;  %v414_v41 = vld [vmem:[#allocation2 + $0x1a] sm:$0xff]  ;;  %v1942_v42 = vld [vmem:[#allocation2 + $0x22] sm:$0xff] }
  0x5b   : > { %671 = vmatpush.msrb.mxu0 %v534_v5  ;;  %587 = vmatpush.msra.mxu1 %v471_v6  ;;  %v369_v34 = vld [vmem:[#allocation2 + $0x2e] sm:$0xff]  ;;  %v370_v37 = vld [vmem:[#allocation2 + $0x36] sm:$0xff]  ;;  %v864_v49 = vld [vmem:[#allocation9 + $0xf0] sm:$0xff] }
  0x5c   : > { %653 = vmatpush.msra.mxu3 %v503_v7  ;;  %588 = vmatmul.f32.vlgmr.msra.gmra.mxu1 %v377_v8  ;;  %v381_v35 = vld [vmem:[#allocation2 + $0x2f] sm:$0xff]  ;;  %v382_v38 = vld [vmem:[#allocation2 + $0x37] sm:$0xff]  ;;  %v880_v50 = vld [vmem:[#allocation9 + $0x170] sm:$0xff] }
  0x5d   : > { %654 = vmatmul.f32.vlgmr.msra.gmra.mxu3 %v401_v9  ;;  %672 = vmatpush.msrb.mxu0 %v533_v10  ;;  %v413_v40 = vld [vmem:[#allocation2 + $0x12] sm:$0xff]  ;;  %v416_v43 = vld [vmem:[#allocation2 + $0x2a] sm:$0xff]  ;;  %v418_v45 = vld [vmem:[#allocation2 + $0x3a] sm:$0xff] }
  0x5e   : > { %v417_v44 = vld [vmem:[#allocation2 + $0x32] sm:$0xff]  ;;  %v881_v48 = vld [vmem:[#allocation9 + $0x178] sm:$0xff]  ;;  %983 = vmatpush.msrb.mxu2 %v865_v46  ;;  %v848_v55 = vld [vmem:[#allocation9 + $0x70] sm:$0xff] }
  0x5f   : > { %673 = vmatpush.msrb.mxu0 %v532_v11  ;;  %1016 = vmatpush.msrb.mxu3 %v881_v48  ;;  %v849_v51 = vld [vmem:[#allocation9 + $0x78] sm:$0xff]  ;;  %v863_v53 = vld [vmem:[#allocation9 + $0xe8] sm:$0xff]  ;;  %v862_v56 = vld [vmem:[#allocation9 + $0xe0] sm:$0xff] }
  0x60   : > { %984 = vmatpush.msrb.mxu2 %v864_v49  ;;  %v879_v54 = vld [vmem:[#allocation9 + $0x168] sm:$0xff]  ;;  %950 = vmatpush.msrb.mxu1 %v849_v51  ;;  %v878_v57 = vld [vmem:[#allocation9 + $0x160] sm:$0xff]  ;;  %v897_v58 = vld [vmem:[#allocation9 + $0x1f8] sm:$0xff] }
  0x61   : > { %674 = vmatpush.msrb.mxu0 %v531_v12  ;;  %1017 = vmatpush.msrb.mxu3 %v880_v50  ;;  %v847_v59 = vld [vmem:[#allocation9 + $0x68] sm:$0xff]  ;;  %v861_v60 = vld [vmem:[#allocation9 + $0xd8] sm:$0xff]  ;;  %v896_v1 = vld [vmem:[#allocation9 + $0x1f0] sm:$0xff] }
  0x62   : > { %558 = vmatmul.f32.gmra.mxu0 %v366_v13  ;;  %624 = vmatmul.f32.gmra.mxu2 %v1916_v52  ;;  %v877_v63 = vld [vmem:[#allocation9 + $0x158] sm:$0xff]  ;;  %v895_v2 = vld [vmem:[#allocation9 + $0x1e8] sm:$0xff]  ;;  %v846_v3 = vld [vmem:[#allocation9 + $0x60] sm:$0xff] }
  0x63   : > { %675 = vmatpush.msrb.mxu0 %v530_v14  ;;  %985 = vmatpush.msrb.mxu2 %v863_v53  ;;  %v860_v4 = vld [vmem:[#allocation9 + $0xd0] sm:$0xff]  ;;  %v845_v6 = vld [vmem:[#allocation9 + $0x58] sm:$0xff]  ;;  %v859_v7 = vld [vmem:[#allocation9 + $0xc8] sm:$0xff] }
  0x64   : > { %591 = vmatmul.f32.gmra.mxu1 %v378_v15  ;;  %1018 = vmatpush.msrb.mxu3 %v879_v54  ;;  %v876_v5 = vld [vmem:[#allocation9 + $0x150] sm:$0xff]  ;;  %v875_v8 = vld [vmem:[#allocation9 + $0x148] sm:$0xff]  ;;  %v894_v9 = vld [vmem:[#allocation9 + $0x1e0] sm:$0xff] }
  0x65   : > { %657 = vmatmul.f32.gmra.mxu3 %v402_v16  ;;  %676 = vmatpush.msrb.mxu0 %v529_v17  ;;  %v893_v10 = vld [vmem:[#allocation9 + $0x1d8] sm:$0xff]  ;;  %v844_v11 = vld [vmem:[#allocation9 + $0x50] sm:$0xff]  ;;  %v843_v13 = vld [vmem:[#allocation9 + $0x48] sm:$0xff] }
  0x66   : > { %951 = vmatpush.msrb.mxu1 %v848_v55  ;;  %986 = vmatpush.msrb.mxu2 %v862_v56  ;;  %v892_v14 = vld [vmem:[#allocation9 + $0x1d0] sm:$0xff]  ;;  %v858_v15 = vld [vmem:[#allocation9 + $0xc0] sm:$0xff]  ;;  %v853_v49 = vld [vmem:[#allocation9 + $0x98] sm:$0xff] }
  0x67   : > { %677 = vmatpush.msrb.mxu0 %v528_v18  ;;  %1019 = vmatpush.msrb.mxu3 %v878_v57  ;;  %v874_v16 = vld [vmem:[#allocation9 + $0x140] sm:$0xff]  ;;  %v836_v46 = vld [vmem:[#allocation9 + $0x10] sm:$0xff]  ;;  %v869_v50 = vld [vmem:[#allocation9 + $0x118] sm:$0xff] }
  0x68   : > { %952 = vmatpush.msrb.mxu1 %v847_v59  ;;  %987 = vmatpush.msrb.mxu2 %v861_v60  ;;  %v842_v18 = vld [vmem:[#allocation9 + $0x40] sm:$0xff]  ;;  %v835_v53 = vld [vmem:[#allocation9 + $0x8] sm:$0xff]  ;;  %v885_v54 = vld [vmem:[#allocation9 + $0x198] sm:$0xff] }
  0x69   : > { %678 = vmatpush.msrb.mxu0 %v527_v19  ;;  %1020 = vmatpush.msrb.mxu3 %v877_v63  ;;  %v891_v19 = vld [vmem:[#allocation9 + $0x1c8] sm:$0xff]  ;;  %v886_v48 = vld [vmem:[#allocation9 + $0x1a0] sm:$0xff]  ;;  %v852_v59 = vld [vmem:[#allocation9 + $0x90] sm:$0xff] }
  0x6a   : > { %561 = vmatmul.f32.gmra.mxu0 %v367_v20  ;;  %627 = vmatmul.f32.gmra.mxu2 %v1721_v0  ;;  %v857_v20 = vld [vmem:[#allocation9 + $0xb8] sm:$0xff]  ;;  %v834_v57 = vld [vmem:[#allocation9] sm:$0xff]  ;;  %v868_v60 = vld [vmem:[#allocation9 + $0x110] sm:$0xff] }
  0x6b   : > { %679 = vmatpush.msrb.mxu0 %v526_v21  ;;  %953 = vmatpush.msrb.mxu1 %v846_v3  ;;  %v873_v21 = vld [vmem:[#allocation9 + $0x138] sm:$0xff]  ;;  %v883_v3 = vld [vmem:[#allocation9 + $0x188] sm:$0xff] }
  0x6c   : > { %594 = vmatmul.f32.gmra.mxu1 %v379_v22  ;;  %988 = vmatpush.msrb.mxu2 %v860_v4  ;;  %v841_v22 = vld [vmem:[#allocation9 + $0x38] sm:$0xff] }
  0x6d   : > { %660 = vmatmul.f32.gmra.mxu3 %v1930_v23  ;;  %680 = vmatpush.msrb.mxu0 %v525_v24  ;;  %v890_v24 = vld [vmem:[#allocation9 + $0x1c0] sm:$0xff]  ;;  %v708_v63 = vld [vmem:[#allocation2 + $0x7] sm:$0xff] }
  0x6e   : > { %1021 = vmatpush.msrb.mxu3 %v876_v5  ;;  %954 = vmatpush.msrb.mxu1 %v845_v6  ;;  %v882_v5 = vld [vmem:[#allocation9 + $0x180] sm:$0xff] }
  0x6f   : > { %681 = vmatpush.msrb.mxu0 %v524_v25  ;;  %989 = vmatpush.msrb.mxu2 %v859_v7 }
  0x70   : > { %1022 = vmatpush.msrb.mxu3 %v875_v8  ;;  %955 = vmatpush.msrb.mxu1 %v844_v11  ;;  %v929_v11 = vld [vmem:[#allocation9 + $0x2f8] sm:$0xff] }
  0x71   : > { %682 = vmatpush.msrb.mxu0 %v523_v26  ;;  %990 = vmatpush.msrb.mxu2 %v858_v15  ;;  %v840_v26 = vld [vmem:[#allocation9 + $0x30] sm:$0xff] }
  0x72   : > { %563 = vmatmul.f32.gmra.mxu0 %v1933_v27  ;;  %629 = vmatmul.f32.gmra.mxu2 %v1721_v0  ;;  %v944_v15 = vld [vmem:[#allocation9 + $0x370] sm:$0xff] }
  0x73   : > { %683 = vmatpush.msrb.mxu0 %v522_v28  ;;  %956 = vmatpush.msrb.mxu1 %v843_v13  ;;  %v889_v28 = vld [vmem:[#allocation9 + $0x1b8] sm:$0xff] }
  0x74   : > { %596 = vmatmul.f32.gmra.mxu1 %v1935_v29  ;;  %1023 = vmatpush.msrb.mxu3 %v874_v16  ;;  %v945_v13 = vld [vmem:[#allocation9 + $0x378] sm:$0xff] }
  0x75   : > { %662 = vmatmul.f32.gmra.mxu3 %v404_v30  ;;  %684 = vmatpush.msrb.mxu0 %v521_v31  ;;  %v856_v30 = vld [vmem:[#allocation9 + $0xb0] sm:$0xff] }
  0x76   : > { %957 = vmatpush.msrb.mxu1 %v842_v18  ;;  %991 = vmatpush.msrb.mxu2 %v857_v20  ;;  %v872_v31 = vld [vmem:[#allocation9 + $0x130] sm:$0xff]  ;;  %v927_v20 = vld [vmem:[#allocation9 + $0x2e8] sm:$0xff] }
  0x77   : > { %685 = vmatpush.msrb.mxu0 %v520_v32  ;;  %1024 = vmatpush.msrb.mxu3 %v873_v21  ;;  %v943_v21 = vld [vmem:[#allocation9 + $0x368] sm:$0xff] }
  0x78   : > { %958 = vmatpush.msrb.mxu1 %v841_v22  ;;  %992 = vmatpush.msrb.mxu2 %v856_v30  ;;  %v1966_v22 = vld [vmem:[%s2117_s2] ss:$0 sm:$0xff]  ;;  %v942_v30 = vld [vmem:[#allocation9 + $0x360] sm:$0xff] }
  0x79   : > { %686 = vmatpush.msrb.mxu0 %v519_v33  ;;  %1025 = vmatpush.msrb.mxu3 %v872_v31  ;;  %v839_v33 = vld [vmem:[#allocation9 + $0x28] sm:$0xff] }
  0x7a   : > { %565 = vmatmul.f32.gmra.mxu0 %v369_v34  ;;  %631 = vmatmul.f32.gmra.mxu2 %v1920_v61 }
  0x7b   : > { %1049 = vmatpush.msra.mxu0 %v897_v58  ;;  %959 = vmatpush.msrb.mxu1 %v840_v26  ;;  %v884_v58 = vld [vmem:[#allocation9 + $0x190] sm:$0xff] }
  0x7c   : > { %598 = vmatmul.f32.gmra.mxu1 %v381_v35  ;;  %v888_v35 = vld [vmem:[#allocation9 + $0x1b0] sm:$0xff] }
  0x7d   : > { %664 = vmatmul.f32.gmra.mxu3 %v405_v36  ;;  %1050 = vmatpush.msra.mxu0 %v896_v1  ;;  %v887_v36 = vld [vmem:[#allocation9 + $0x1a8] sm:$0xff]  ;;  %v912_v26 = vld [vmem:[#allocation9 + $0x270] sm:$0xff] }
  0x7e   : > { %960 = vmatpush.msrb.mxu1 %v839_v33  ;;  %v851_v1 = vld [vmem:[#allocation9 + $0x88] sm:$0xff] }
  0x7f   : > { %1051 = vmatpush.msra.mxu0 %v895_v2  ;;  %v867_v2 = vld [vmem:[#allocation9 + $0x108] sm:$0xff] }
  0x80   : > { %v911_v33 = vld [vmem:[#allocation9 + $0x268] sm:$0xff] }
  0x81   : > { %1052 = vmatpush.msra.mxu0 %v894_v9  ;;  %v850_v9 = vld [vmem:[#allocation9 + $0x80] sm:$0xff] }
  0x82   : > { %568 = vmatmul.f32.gmra.mxu0 %v370_v37  ;;  %634 = vmatmul.f32.gmra.mxu2 %v1923_v62 }
  0x83   : > { %1053 = vmatpush.msra.mxu0 %v893_v10  ;;  %v866_v10 = vld [vmem:[#allocation9 + $0x100] sm:$0xff] }
  0x84   : > { %601 = vmatmul.f32.gmra.mxu1 %v382_v38  ;;  %v855_v38 = vld [vmem:[#allocation9 + $0xa8] sm:$0xff] }
  0x85   : > { %667 = vmatmul.f32.gmra.mxu3 %v406_v39  ;;  %1054 = vmatpush.msra.mxu0 %v892_v14  ;;  %v871_v39 = vld [vmem:[#allocation9 + $0x128] sm:$0xff]  ;;  %v928_v14 = vld [vmem:[#allocation9 + $0x2f0] sm:$0xff] }
  0x86   : > { %993 = vmatpush.msrb.mxu2 %v855_v38  ;;  %1026 = vmatpush.msrb.mxu3 %v871_v39  ;;  %v910_v39 = vld [vmem:[#allocation9 + $0x260] sm:$0xff] }
  0x87   : > { %1055 = vmatpush.msra.mxu0 %v891_v19  ;;  %v913_v19 = vld [vmem:[#allocation9 + $0x278] sm:$0xff] }
  0x89   : > { %1056 = vmatpush.msra.mxu0 %v890_v24 }
  0x8a   : > { %687 = vmatmul.f32.vlgmr.msrb.gmra.mxu0 %v413_v40  ;;  %v838_v40 = vld [vmem:[#allocation9 + $0x20] sm:$0xff] }
  0x8b   : > { %1057 = vmatpush.msra.mxu0 %v889_v28  ;;  %961 = vmatpush.msrb.mxu1 %v838_v40  ;;  %v926_v28 = vld [vmem:[#allocation9 + $0x2e0] sm:$0xff]  ;;  %v924_v40 = vld [vmem:[#allocation9 + $0x2d0] sm:$0xff] }
  0x8d   : > { %1058 = vmatpush.msra.mxu0 %v888_v35  ;;  %v925_v35 = vld [vmem:[#allocation9 + $0x2d8] sm:$0xff] }
  0x8f   : > { %1059 = vmatpush.msra.mxu0 %v887_v36  ;;  %v941_v36 = vld [vmem:[#allocation9 + $0x358] sm:$0xff] }
  0x91   : > { %1060 = vmatpush.msra.mxu0 %v886_v48  ;;  %v939_v48 = vld [vmem:[#allocation9 + $0x348] sm:$0xff] }
  0x92   : > { %690 = vmatmul.f32.gmra.mxu0 %v414_v41  ;;  %v837_v41 = vld [vmem:[#allocation9 + $0x18] sm:$0xff] }
  0x93   : > { %962 = vmatpush.msrb.mxu1 %v837_v41  ;;  %1061 = vmatpush.msra.mxu0 %v885_v54  ;;  %v940_v41 = vld [vmem:[#allocation9 + $0x350] sm:$0xff] }
  0x95   : > { %963 = vmatpush.msrb.mxu1 %v836_v46  ;;  %1062 = vmatpush.msra.mxu0 %v884_v58  ;;  %v923_v46 = vld [vmem:[#allocation9 + $0x2c8] sm:$0xff]  ;;  %v922_v58 = vld [vmem:[#allocation9 + $0x2c0] sm:$0xff] }
  0x97   : > { %964 = vmatpush.msrb.mxu1 %v835_v53  ;;  %1063 = vmatpush.msra.mxu0 %v883_v3 }
  0x99   : > { %965 = vmatpush.msrb.mxu1 %v834_v57  ;;  %1064 = vmatpush.msra.mxu0 %v882_v5  ;;  %v1983_v5 = vld [vmem:[#allocation10 + $0x70] sm:$0xff] }
  0x9a   : > { %693 = vmatmul.f32.gmra.mxu0 %v1942_v42  ;;  %966 = vmatmul.f32.vlgmr.msrb.gmra.mxu1 %v708_v63  ;;  %v904_v63 = vld [vmem:[#allocation9 + $0x230] sm:$0xff] }
  0x9b   : > { %1082 = vmatpush.msra.mxu1 %v913_v19  ;;  %v1988_v19 = vld [vmem:[#allocation10 + $0x60] sm:$0xff] }
  0x9d   : > { %1083 = vmatpush.msra.mxu1 %v912_v26  ;;  %v1991_v26 = vld [vmem:[#allocation10 + $0x58] sm:$0xff] }
  0x9f   : > { %1084 = vmatpush.msra.mxu1 %v911_v33 }
  0xa1   : > { %1085 = vmatpush.msra.mxu1 %v910_v39  ;;  %v916_v39 = vld [vmem:[#allocation9 + $0x290] sm:$0xff] }
  0xa2   : > { %695 = vmatmul.f32.gmra.mxu0 %v416_v43  ;;  %v854_v43 = vld [vmem:[#allocation9 + $0xa0] sm:$0xff] }
  0xa3   : > { %994 = vmatpush.msrb.mxu2 %v854_v43 }
  0xa5   : > { %995 = vmatpush.msrb.mxu2 %v853_v49 }
  0xa7   : > { %996 = vmatpush.msrb.mxu2 %v852_v59  ;;  %v921_v59 = vld [vmem:[#allocation9 + $0x2b8] sm:$0xff] }
  0xa9   : > { %997 = vmatpush.msrb.mxu2 %v851_v1  ;;  %v920_v1 = vld [vmem:[#allocation9 + $0x2b0] sm:$0xff] }
  0xaa   : > { %697 = vmatmul.f32.gmra.mxu0 %v417_v44  ;;  %v870_v44 = vld [vmem:[#allocation9 + $0x120] sm:$0xff] }
  0xab   : > { %1027 = vmatpush.msrb.mxu3 %v870_v44  ;;  %998 = vmatpush.msrb.mxu2 %v850_v9  ;;  %v909_v44 = vld [vmem:[#allocation9 + $0x258] sm:$0xff] }
  0xac   : > { %1086 = vmatpush.msra.mxu1 %v909_v44 }
  0xad   : > { %1028 = vmatpush.msrb.mxu3 %v869_v50  ;;  %1115 = vmatpush.msra.mxu2 %v929_v11  ;;  %v908_v50 = vld [vmem:[#allocation9 + $0x250] sm:$0xff]  ;;  %v902_v11 = vld [vmem:[#allocation9 + $0x220] sm:$0xff] }
  0xae   : > { %1087 = vmatpush.msra.mxu1 %v908_v50  ;;  %v2003_v50 = vld [vmem:[#allocation10 + $0x40] sm:$0xff] }
  0xaf   : > { %1029 = vmatpush.msrb.mxu3 %v868_v60  ;;  %1116 = vmatpush.msra.mxu2 %v928_v14  ;;  %v937_v60 = vld [vmem:[#allocation9 + $0x338] sm:$0xff]  ;;  %v918_v14 = vld [vmem:[#allocation9 + $0x2a0] sm:$0xff] }
  0xb1   : > { %1030 = vmatpush.msrb.mxu3 %v867_v2  ;;  %1117 = vmatpush.msra.mxu2 %v927_v20  ;;  %v936_v2 = vld [vmem:[#allocation9 + $0x330] sm:$0xff]  ;;  %v917_v20 = vld [vmem:[#allocation9 + $0x298] sm:$0xff] }
  0xb2   : > { %700 = vmatmul.f32.gmra.mxu0 %v418_v45 }
  0xb3   : > { %1031 = vmatpush.msrb.mxu3 %v866_v10  ;;  %1118 = vmatpush.msra.mxu2 %v926_v28  ;;  %v935_v10 = vld [vmem:[#allocation9 + $0x328] sm:$0xff] }
  0xb5   : > { %1148 = vmatpush.msra.mxu3 %v945_v13  ;;  %1119 = vmatpush.msra.mxu2 %v925_v35  ;;  %v1986_v13 = vld [vmem:[#allocation10 + $0x68] sm:$0xff] }
  0xb7   : > { %1149 = vmatpush.msra.mxu3 %v944_v15  ;;  %1120 = vmatpush.msra.mxu2 %v924_v40  ;;  %v901_v15 = vld [vmem:[#allocation9 + $0x218] sm:$0xff]  ;;  %v932_v40 = vld [vmem:[#allocation9 + $0x310] sm:$0xff] }
  0xb9   : > { %1150 = vmatpush.msra.mxu3 %v943_v21  ;;  %1121 = vmatpush.msra.mxu2 %v923_v46  ;;  %v933_v21 = vld [vmem:[#allocation9 + $0x318] sm:$0xff]  ;;  %v915_v46 = vld [vmem:[#allocation9 + $0x288] sm:$0xff] }
  0xbb   : > { %1151 = vmatpush.msra.mxu3 %v942_v30  ;;  %1122 = vmatpush.msra.mxu2 %v922_v58  ;;  %v899_v30 = vld [vmem:[#allocation9 + $0x208] sm:$0xff] }
  0xbd   : > { %1152 = vmatpush.msra.mxu3 %v941_v36  ;;  %1123 = vmatpush.msra.mxu2 %v921_v59  ;;  %v2010_v59 = vld [vmem:[#allocation10 + $0x30] sm:$0xff] }
  0xbf   : > { %1153 = vmatpush.msra.mxu3 %v940_v41  ;;  %1124 = vmatpush.msra.mxu2 %v920_v1 }
  0xc1   : > { %1154 = vmatpush.msra.mxu3 %v939_v48  ;;  %v931_v48 = vld [vmem:[#allocation9 + $0x308] sm:$0xff] }
  0xd7   : > { %v1945_v12 = vpop.f32.mrf.mxu0 }
  0xd8   : > { %v557_v31 = vadd.f32 %v1966_v22, %v1945_v12 }
  0xd9   : > { %v1947_v17 = vpop.f32.mrf.mxu1 }
  0xda   : > { %v590_v43 = vadd.f32 %v1947_v17, %v557_v31  ;;  %v907_v17 = vld [vmem:[#allocation9 + $0x248] sm:$0xff]  ;;  %v1994_v31 = vld [vmem:[#allocation10 + $0x50] sm:$0xff] }
  0xdb   : > { %1088 = vmatpush.msra.mxu1 %v907_v17 }
  0xdd   : > { %v1949_v25 = vpop.f32.mrf.mxu2 }
  0xde   : > { %v623_v12 = vadd.f32 %v1949_v25, %v590_v43  ;;  %v906_v25 = vld [vmem:[#allocation9 + $0x240] sm:$0xff] }
  0xdf   : > { %v1951_v32 = vpop.f32.mrf.mxu0  ;;  %1089 = vmatpush.msra.mxu1 %v906_v25  ;;  %v898_v43 = vld [vmem:[#allocation9 + $0x200] sm:$0xff]  ;;  %v2008_v25 = vld [vmem:[#allocation10 + $0x38] sm:$0xff] }
  0xe0   : > { %v1953_v34 = vpop.f32.mrf.mxu3  ;;  %v560_v49 = vadd.f32 %v1966_v22, %v1951_v32  ;;  %v938_v32 = vld [vmem:[#allocation9 + $0x340] sm:$0xff] }
  0xe1   : > { %v1955_v37 = vpop.f32.mrf.mxu1  ;;  %1155 = vmatpush.msra.mxu3 %v938_v32  ;;  %v1519_v32 = vld [vmem:[#allocation2 + $0x8] sm:$0xff] }
  0xe2   : > { %v593_v54 = vadd.f32 %v1955_v37, %v560_v49  ;;  %v1979_v37 = vld [vmem:[#allocation10 + $0x78] sm:$0xff] }
  0xe3   : > { %1156 = vmatpush.msra.mxu3 %v937_v60  ;;  %1201 = vmatpush.msrb.mxu0 %v1979_v37 }
  0xe5   : > { %v1957_v45 = vpop.f32.mrf.mxu2  ;;  %1157 = vmatpush.msra.mxu3 %v936_v2  ;;  %1202 = vmatpush.msrb.mxu0 %v1983_v5 }
  0xe6   : > { %v626_v57 = vadd.f32 %v1957_v45, %v593_v54 }
  0xe7   : > { %v562_v51 = vpop.f32.mrf.mxu0  ;;  %1158 = vmatpush.msra.mxu3 %v935_v10  ;;  %1203 = vmatpush.msrb.mxu0 %v1986_v13 }
  0xe8   : > { %v1959_v55 = vpop.f32.mrf.mxu3  ;;  %v656_v51 = vadd.f32 %v1953_v34, %v623_v12  ;;  %v905_v34 = vld [vmem:[#allocation9 + $0x238] sm:$0xff]  ;;  %v1998_v12 = vld [vmem:[#allocation10 + $0x48] sm:$0xff] }
  0xe9   : > { %v595_v56 = vpop.f32.mrf.mxu1  ;;  %1090 = vmatpush.msra.mxu1 %v905_v34  ;;  %v659_v45 = vadd.f32 %v1959_v55, %v626_v57  ;;  %v919_v55 = vld [vmem:[#allocation9 + $0x2a8] sm:$0xff]  ;;  %1204 = vmatpush.msrb.mxu0 %v1988_v19 }
  0xea   : > { %1125 = vmatpush.msra.mxu2 %v919_v55 }
  0xeb   : > { %1091 = vmatpush.msra.mxu1 %v904_v63  ;;  %1205 = vmatpush.msrb.mxu0 %v1991_v26  ;;  %v2016_v63 = vld [vmem:[#allocation10 + $0x28] sm:$0xff] }
  0xec   : > { %1126 = vmatpush.msra.mxu2 %v918_v14 }
  0xed   : > { %v628_v4 = vpop.f32.mrf.mxu2  ;;  %1206 = vmatpush.msrb.mxu0 %v1994_v31 }
  0xee   : > { %v903_v4 = vld [vmem:[#allocation9 + $0x228] sm:$0xff]  ;;  %1127 = vmatpush.msra.mxu2 %v917_v20 }
  0xef   : > { %v564_v6 = vpop.f32.mrf.mxu0  ;;  %1092 = vmatpush.msra.mxu1 %v903_v4  ;;  %1207 = vmatpush.msrb.mxu0 %v1998_v12 }
  0xf0   : > { %v661_v7 = vpop.f32.mrf.mxu3  ;;  %1128 = vmatpush.msra.mxu2 %v916_v39 }
  0xf1   : > { %v597_v8 = vpop.f32.mrf.mxu1  ;;  %1093 = vmatpush.msra.mxu1 %v902_v11  ;;  %1208 = vmatpush.msrb.mxu0 %v2003_v50 }
  0xf2   : > { %1129 = vmatpush.msra.mxu2 %v915_v46 }
  0xf3   : > { %1094 = vmatpush.msra.mxu1 %v901_v15  ;;  %1209 = vmatpush.msrb.mxu0 %v2008_v25 }
  0xf5   : > { %v630_v16 = vpop.f32.mrf.mxu2  ;;  %1210 = vmatpush.msrb.mxu0 %v2010_v59 }
  0xf6   : > { %v934_v16 = vld [vmem:[#allocation9 + $0x320] sm:$0xff] }
  0xf7   : > { %v1961_v18 = vpop.f32.mrf.mxu0  ;;  %1159 = vmatpush.msra.mxu3 %v934_v16  ;;  %1211 = vmatpush.msrb.mxu0 %v2016_v63 }
  0xf8   : > { %v663_v24 = vpop.f32.mrf.mxu3  ;;  %v567_v44 = vadd.f32 %v1966_v22, %v1961_v18 }
  0xf9   : > { %v900_v24 = vld [vmem:[#allocation9 + $0x210] sm:$0xff]  ;;  %1160 = vmatpush.msra.mxu3 %v933_v21  ;;  %v599_v41 = vpop.f32.mrf.mxu1 }
  0xfa   : > { %1095 = vmatpush.msra.mxu1 %v900_v24  ;;  %v600_v17 = vadd.f32 %v599_v41, %v567_v44  ;;  %v758_v24 = vld [vmem:[#allocation2 + $0x23] sm:$0xff] }
  0xfb   : > { %1161 = vmatpush.msra.mxu3 %v932_v40 }
  0xfc   : > { %1096 = vmatpush.msra.mxu1 %v899_v30 }
  0xfd   : > { %v632_v49 = vpop.f32.mrf.mxu2  ;;  %1162 = vmatpush.msra.mxu3 %v931_v48 }
  0xfe   : > { %1097 = vmatpush.msra.mxu1 %v898_v43  ;;  %v633_v57 = vadd.f32 %v632_v49, %v600_v17 }
  0xff   : > { %v1970_v38 = vpop.f32.mrf.mxu0 }
 0x100   : > { %1386 = vmatpush.msrb.mxu1 %v1979_v37  ;;  %v665_v18 = vpop.f32.mrf.mxu3  ;;  %v570_v60 = vadd.f32 %v1966_v22, %v1970_v38 }
 0x101   : > { %v602_v34 = vpop.f32.mrf.mxu1  ;;  %v666_v1 = vadd.f32 %v665_v18, %v633_v57 }
 0x102   : > { %1389 = vmatpush.msrb.mxu1 %v1983_v5  ;;  %v603_v22 = vadd.f32 %v602_v34, %v570_v60 }
 0x104   : > { %1392 = vmatpush.msrb.mxu1 %v1986_v13 }
 0x105   : > { %v635_v2 = vpop.f32.mrf.mxu2 }
 0x106   : > { %1395 = vmatpush.msrb.mxu1 %v1988_v19  ;;  %v636_v4 = vadd.f32 %v635_v2, %v603_v22 }
 0x107   : > { %v688_v53 = vpop.f32.mrf.mxu0 }
 0x108   : > { %v689_v56 = vadd.f32 %v688_v53, %v656_v51  ;;  %v930_v51 = vld [vmem:[#allocation9 + $0x300] sm:$0xff]  ;;  %1398 = vmatpush.msrb.mxu1 %v1991_v26 }
 0x109   : > { %1163 = vmatpush.msra.mxu3 %v930_v51 }
 0x10a   : > { %704 = vst [vmem:[#allocation2 + $0x10] sm:$0xff] %v689_v56  ;;  %1065 = vmatmul.f32.vlgmr.msra.gmra.mxu0 %v689_v56  ;;  %1401 = vmatpush.msrb.mxu1 %v1994_v31 }
 0x10c   : > { %1404 = vmatpush.msrb.mxu1 %v1998_v12 }
 0x10e   : > { %1407 = vmatpush.msrb.mxu1 %v2003_v50 }
 0x10f   : > { %v691_v3 = vpop.f32.mrf.mxu0 }
 0x110   : > { %v692_v6 = vadd.f32 %v691_v3, %v659_v45  ;;  %v735_v3 = vld [vmem:[#allocation2 + $0x25] sm:$0xff]  ;;  %1410 = vmatpush.msrb.mxu1 %v2008_v25 }
 0x111   : > { %v709_v7 = vld [vmem:[#allocation2 + $0xf] sm:$0xff] }
 0x112   : > { %v720_v8 = vld [vmem:[#allocation2 + $0xa] sm:$0xff]  ;;  %705 = vst [vmem:[#allocation2 + $0x18] sm:$0xff] %v692_v6  ;;  %969 = vmatmul.f32.gmra.mxu1 %v709_v7  ;;  %1068 = vmatmul.f32.gmra.mxu0 %v692_v6  ;;  %v1183_v7 = vld [vmem:[#allocation10 + $0x10] sm:$0xff] }
 0x113   : > { %v732_v9 = vld [vmem:[#allocation2 + $0xd] sm:$0xff]  ;;  %999 = vmatmul.f32.vlgmr.msrb.gmra.mxu2 %v720_v8  ;;  %1413 = vmatpush.msrb.mxu1 %v2010_v59 }
 0x114   : > { %1032 = vmatmul.f32.vlgmr.msrb.gmra.mxu3 %v732_v9  ;;  %v1184_v6 = vld [vmem:[#allocation10 + $0x18] sm:$0xff] }
 0x115   : > { %1388 = vmatpush.msrb.mxu3 %v1979_v37  ;;  %1416 = vmatpush.msrb.mxu1 %v2016_v63 }
 0x117   : > { %v694_v28 = vpop.f32.mrf.mxu0  ;;  %1391 = vmatpush.msrb.mxu3 %v1983_v5 }
 0x119   : > { %v710_v33 = vld [vmem:[#allocation2 + $0x17] sm:$0xff]  ;;  %v711_v54 = vld [vmem:[#allocation2 + $0x1f] sm:$0xff]  ;;  %1394 = vmatpush.msrb.mxu3 %v1986_v13 }
 0x11a   : > { %v721_v35 = vld [vmem:[#allocation2 + $0x12] sm:$0xff]  ;;  %972 = vmatmul.f32.gmra.mxu1 %v710_v33  ;;  %1071 = vmatmul.f32.gmra.mxu0 %v1721_v0  ;;  %v722_v56 = vld [vmem:[#allocation2 + $0x1a] sm:$0xff] }
 0x11b   : > { %v733_v36 = vld [vmem:[#allocation2 + $0x15] sm:$0xff]  ;;  %1002 = vmatmul.f32.gmra.mxu2 %v721_v35  ;;  %v734_v58 = vld [vmem:[#allocation2 + $0x1d] sm:$0xff]  ;;  %1397 = vmatpush.msrb.mxu3 %v1988_v19 }
 0x11c   : > { %1035 = vmatmul.f32.gmra.mxu3 %v733_v36  ;;  %v914_v0 = vld [vmem:[#allocation9 + $0x280] sm:$0xff]  ;;  %v780_v21 = vld [vmem:[#allocation2 + $0x19] sm:$0xff] }
 0x11d   : > { %1130 = vmatpush.msra.mxu2 %v914_v0  ;;  %1400 = vmatpush.msrb.mxu3 %v1991_v26  ;;  %v756_v16 = vld [vmem:[#allocation2 + $0x13] sm:$0xff] }
 0x11e   : > { %v768_v20 = vld [vmem:[#allocation2 + $0x16] sm:$0xff] }
 0x11f   : > { %v696_v53 = vpop.f32.mrf.mxu0  ;;  %1387 = vmatpush.msrb.mxu2 %v1979_v37  ;;  %v1185_v37 = vld [vmem:[#allocation10 + $0x20] sm:$0xff]  ;;  %1403 = vmatpush.msrb.mxu3 %v1994_v31 }
 0x120   : > { %1212 = vmatpush.msrb.mxu0 %v1185_v37  ;;  %1419 = vmatpush.msrb.mxu1 %v1185_v37 }
 0x121   : > { %1390 = vmatpush.msrb.mxu2 %v1983_v5  ;;  %v668_v5 = vpop.f32.mrf.mxu3  ;;  %1406 = vmatpush.msrb.mxu3 %v1998_v12 }
 0x122   : > { %974 = vmatmul.f32.gmra.mxu1 %v711_v54  ;;  %1073 = vmatmul.f32.gmra.mxu0 %v1519_v32  ;;  %v669_v8 = vadd.f32 %v668_v5, %v636_v4 }
 0x123   : > { %1005 = vmatmul.f32.gmra.mxu2 %v722_v56  ;;  %1213 = vmatpush.msrb.mxu0 %v1184_v6 }
 0x124   : > { %1038 = vmatmul.f32.gmra.mxu3 %v734_v58  ;;  %1393 = vmatpush.msrb.mxu2 %v1986_v13  ;;  %v1181_v13 = vld [vmem:[#allocation10] sm:$0xff] }
 0x125   : > { %1214 = vmatpush.msrb.mxu0 %v1183_v7  ;;  %1409 = vmatpush.msrb.mxu3 %v2003_v50 }
 0x126   : > { %1396 = vmatpush.msrb.mxu2 %v1988_v19  ;;  %v757_v19 = vld [vmem:[#allocation2 + $0x1b] sm:$0xff]  ;;  %1422 = vmatpush.msrb.mxu1 %v1184_v6 }
 0x127   : > { %v698_v45 = vpop.f32.mrf.mxu0  ;;  %1412 = vmatpush.msrb.mxu3 %v2008_v25 }
 0x128   : > { %v699_v38 = vadd.f32 %v698_v45, %v666_v1  ;;  %1399 = vmatpush.msrb.mxu2 %v1991_v26  ;;  %1425 = vmatpush.msrb.mxu1 %v1183_v7  ;;  %v769_v26 = vld [vmem:[#allocation2 + $0x1e] sm:$0xff] }
 0x129   : > { %1415 = vmatpush.msrb.mxu3 %v2010_v59 }
 0x12a   : > { %706 = vst [vmem:[#allocation2 + $0x30] sm:$0xff] %v699_v38  ;;  %976 = vmatmul.f32.gmra.mxu1 %v1935_v29  ;;  %1075 = vmatmul.f32.gmra.mxu0 %v699_v38 }
 0x12b   : > { %1007 = vmatmul.f32.gmra.mxu2 %v1942_v42  ;;  %v1182_v42 = vld [vmem:[#allocation10 + $0x8] sm:$0xff]  ;;  %1418 = vmatpush.msrb.mxu3 %v2016_v63 }
 0x12c   : > { %1040 = vmatmul.f32.gmra.mxu3 %v735_v3  ;;  %1402 = vmatpush.msrb.mxu2 %v1994_v31 }
 0x12d   : > { %1215 = vmatpush.msrb.mxu0 %v1182_v42  ;;  %1421 = vmatpush.msrb.mxu3 %v1185_v37 }
 0x12e   : > { %1405 = vmatpush.msrb.mxu2 %v1998_v12  ;;  %1428 = vmatpush.msrb.mxu1 %v1182_v42 }
 0x12f   : > { %v701_v9 = vpop.f32.mrf.mxu0  ;;  %1216 = vmatpush.msrb.mxu0 %v1181_v13  ;;  %1424 = vmatpush.msrb.mxu3 %v1184_v6 }
 0x130   : > { %v702_v29 = vadd.f32 %v701_v9, %v669_v8  ;;  %1408 = vmatpush.msrb.mxu2 %v2003_v50  ;;  %1431 = vmatpush.msrb.mxu1 %v1181_v13  ;;  %v1517_v50 = vld [vmem:[%s2119_s4] ss:$0 sm:$0xff] }
 0x131   : > { %v713_v55 = vld [vmem:[#allocation2 + $0x2f] sm:$0xff]  ;;  %1427 = vmatpush.msrb.mxu3 %v1183_v7 }
 0x132   : > { %v724_v10 = vld [vmem:[#allocation2 + $0x2a] sm:$0xff]  ;;  %707 = vst [vmem:[#allocation2 + $0x38] sm:$0xff] %v702_v29  ;;  %979 = vmatmul.f32.gmra.mxu1 %v713_v55  ;;  %1078 = vmatmul.f32.gmra.mxu0 %v702_v29  ;;  %v1518_v29 = vld [vmem:[%s2121_s6] ss:$0 sm:$0xff] }
 0x133   : > { %v736_v11 = vld [vmem:[#allocation2 + $0x2d] sm:$0xff]  ;;  %1009 = vmatmul.f32.gmra.mxu2 %v724_v10  ;;  %1430 = vmatpush.msrb.mxu3 %v1182_v42 }
 0x134   : > { %1042 = vmatmul.f32.gmra.mxu3 %v736_v11  ;;  %1411 = vmatpush.msrb.mxu2 %v2008_v25  ;;  %v759_v28 = vld [vmem:[#allocation2 + $0x2b] sm:$0xff] }
 0x135   : > { %1433 = vmatpush.msrb.mxu3 %v1181_v13  ;;  %v782_v30 = vld [vmem:[#allocation2 + $0x29] sm:$0xff] }
 0x136   : > { %1414 = vmatpush.msrb.mxu2 %v2010_v59  ;;  %v771_v33 = vld [vmem:[#allocation2 + $0x2e] sm:$0xff] }
 0x138   : > { %1417 = vmatpush.msrb.mxu2 %v2016_v63 }
 0x139   : > { %v725_v14 = vld [vmem:[#allocation2 + $0x32] sm:$0xff]  ;;  %v761_v36 = vld [vmem:[#allocation2 + $0x3b] sm:$0xff] }
 0x13a   : > { %v737_v15 = vld [vmem:[#allocation2 + $0x35] sm:$0xff]  ;;  %1098 = vmatmul.f32.vlgmr.msra.gmra.mxu1 %v756_v16  ;;  %1217 = vmatmul.f32.vlgmr.msrb.gmra.mxu0 %v1912_v47  ;;  %v773_v41 = vld [vmem:[#allocation2 + $0x3e] sm:$0xff] }
 0x13b   : > { %1012 = vmatmul.f32.gmra.mxu2 %v725_v14  ;;  %v760_v31 = vld [vmem:[#allocation2 + $0x33] sm:$0xff] }
 0x13c   : > { %1045 = vmatmul.f32.gmra.mxu3 %v737_v15  ;;  %1420 = vmatpush.msrb.mxu2 %v1185_v37  ;;  %v783_v35 = vld [vmem:[#allocation2 + $0x31] sm:$0xff]  ;;  %v784_v40 = vld [vmem:[#allocation2 + $0x39] sm:$0xff] }
 0x13d   : > { %v772_v39 = vld [vmem:[#allocation2 + $0x36] sm:$0xff] }
 0x13e   : > { %1423 = vmatpush.msrb.mxu2 %v1184_v6 }
 0x140   : > { %1426 = vmatpush.msrb.mxu2 %v1183_v7 }
 0x142   : > { %1101 = vmatmul.f32.gmra.mxu1 %v757_v19  ;;  %1429 = vmatpush.msrb.mxu2 %v1182_v42 }
 0x143   : > { %1131 = vmatmul.f32.vlgmr.msra.gmra.mxu2 %v768_v20 }
 0x144   : > { %1164 = vmatmul.f32.vlgmr.msra.gmra.mxu3 %v780_v21  ;;  %1432 = vmatpush.msrb.mxu2 %v1181_v13 }
 0x14a   : > { %1104 = vmatmul.f32.gmra.mxu1 %v758_v24 }
 0x14b   : > { %1134 = vmatmul.f32.gmra.mxu2 %v769_v26 }
 0x14c   : > { %1167 = vmatmul.f32.gmra.mxu3 %v1930_v23  ;;  %v785_v23 = vld [vmem:[#allocation2 + $0x41] sm:$0xff] }
 0x152   : > { %1106 = vmatmul.f32.gmra.mxu1 %v759_v28 }
 0x153   : > { %1137 = vmatmul.f32.gmra.mxu2 %v1933_v27  ;;  %v967_v27 = vpop.f32.mrf.mxu1 }
 0x154   : > { %1170 = vmatmul.f32.gmra.mxu3 %v782_v30  ;;  %v968_v45 = vadd.f32 %v1517_v50, %v967_v27 }
 0x15a   : > { %1108 = vmatmul.f32.gmra.mxu1 %v760_v31 }
 0x15b   : > { %1139 = vmatmul.f32.gmra.mxu2 %v771_v33 }
 0x15c   : > { %1172 = vmatmul.f32.gmra.mxu3 %v783_v35 }
 0x162   : > { %1111 = vmatmul.f32.gmra.mxu1 %v761_v36 }
 0x163   : > { %1141 = vmatmul.f32.gmra.mxu2 %v772_v39 }
 0x164   : > { %1174 = vmatmul.f32.gmra.mxu3 %v784_v40 }
 0x16a   : > { %1220 = vmatmul.f32.vlgmr.msrb.gmra.mxu1 %v1916_v52 }
 0x16b   : > { %1144 = vmatmul.f32.gmra.mxu2 %v773_v41 }
 0x16c   : > { %1177 = vmatmul.f32.gmra.mxu3 %v785_v23 }
 0x173   : > { %1223 = vmatmul.f32.vlgmr.msrb.gmra.mxu2 %v1920_v61 }
 0x174   : > { %1226 = vmatmul.f32.vlgmr.msrb.gmra.mxu3 %v1923_v62 }
 0x187   : > { %v1066_v43 = vpop.f32.mrf.mxu0 }
 0x18f   : > { %v970_v12 = vpop.f32.mrf.mxu1  ;;  %v1069_v44 = vpop.f32.mrf.mxu0 }
 0x190   : > { %v971_v51 = vadd.f32 %v1517_v50, %v970_v12 }
 0x196   : > { %v1000_v46 = vpop.f32.mrf.mxu2 }
 0x197   : > { %v1033_v48 = vpop.f32.mrf.mxu3  ;;  %v973_v49 = vpop.f32.mrf.mxu1  ;;  %v1001_v3 = vadd.f32 %v1000_v46, %v968_v45 }
 0x198   : > { %v1072_v0 = vpop.f32.mrf.mxu0 }
 0x199   : > { %v1034_v5 = vadd.f32 %v1033_v48, %v1001_v3 }
 0x19b   : > { %v1067_v8 = vadd.f32 %v1066_v43, %v1034_v5 }
 0x19e   : > { %v1003_v53 = vpop.f32.mrf.mxu2 }
 0x19f   : > { %v1004_v17 = vadd.f32 %v1003_v53, %v971_v51  ;;  %v1036_v18 = vpop.f32.mrf.mxu3  ;;  %v975_v54 = vpop.f32.mrf.mxu1 }
 0x1a0   : > { %v1074_v25 = vpop.f32.mrf.mxu0 }
 0x1a1   : > { %v1037_v56 = vadd.f32 %v1036_v18, %v1004_v17 }
 0x1a3   : > { %v1070_v57 = vadd.f32 %v1069_v44, %v1037_v56 }
 0x1a6   : > { %v1006_v58 = vpop.f32.mrf.mxu2 }
 0x1a7   : > { %v1039_v32 = vpop.f32.mrf.mxu3  ;;  %v977_v59 = vpop.f32.mrf.mxu1 }
 0x1a8   : > { %v1076_v1 = vpop.f32.mrf.mxu0  ;;  %v978_v35 = vadd.f32 %v1517_v50, %v977_v59 }
 0x1ae   : > { %v1008_v60 = vpop.f32.mrf.mxu2 }
 0x1af   : > { %v1041_v34 = vpop.f32.mrf.mxu3  ;;  %v980_v63 = vpop.f32.mrf.mxu1 }
 0x1b0   : > { %v1079_v37 = vpop.f32.mrf.mxu0  ;;  %v981_v41 = vadd.f32 %v1517_v50, %v980_v63 }
 0x1b6   : > { %v1010_v2 = vpop.f32.mrf.mxu2 }
 0x1b7   : > { %v1043_v22 = vpop.f32.mrf.mxu3  ;;  %v1099_v38 = vpop.f32.mrf.mxu1  ;;  %v1011_v27 = vadd.f32 %v1010_v2, %v978_v35 }
 0x1b8   : > { %v1100_v9 = vadd.f32 %v1099_v38, %v1067_v8  ;;  %v1218_v55 = vpop.f32.mrf.mxu0 }
 0x1b9   : > { %v1219_v15 = vadd.f32 %v1518_v29, %v1218_v55  ;;  %v1044_v44 = vadd.f32 %v1043_v22, %v1011_v27 }
 0x1bb   : > { %v1077_v53 = vadd.f32 %v1076_v1, %v1044_v44 }
 0x1be   : > { %v1013_v4 = vpop.f32.mrf.mxu2 }
 0x1bf   : > { %v1046_v6 = vpop.f32.mrf.mxu3  ;;  %v1102_v7 = vpop.f32.mrf.mxu1  ;;  %v1014_v43 = vadd.f32 %v1013_v4, %v981_v41 }
 0x1c0   : > { %v1103_v36 = vadd.f32 %v1102_v7, %v1070_v57 }
 0x1c1   : > { %v1047_v48 = vadd.f32 %v1046_v6, %v1014_v43 }
 0x1c3   : > { %v1080_v18 = vadd.f32 %v1079_v37, %v1047_v48 }
 0x1c6   : > { %v1132_v42 = vpop.f32.mrf.mxu2 }
 0x1c7   : > { %v1133_v10 = vadd.f32 %v1132_v42, %v1100_v9  ;;  %v1165_v11 = vpop.f32.mrf.mxu3  ;;  %v1105_v13 = vpop.f32.mrf.mxu1 }
 0x1c9   : > { %v1166_v14 = vadd.f32 %v1165_v11, %v1133_v10 }
 0x1cb   : > { %v1230_v16 = vmul.f32 %v1166_v14, %v1912_v47 }
 0x1cd   : > { %v1232_v19 = vmul.f32 %v1230_v16, %v1219_v15 }
 0x1ce   : > { %v1135_v20 = vpop.f32.mrf.mxu2 }
 0x1cf   : > { %v1234_v21 = vadd.f32 %v1232_v19, %v1912_v47  ;;  %v1168_v24 = vpop.f32.mrf.mxu3  ;;  %v1107_v26 = vpop.f32.mrf.mxu1  ;;  %v1136_v23 = vadd.f32 %v1135_v20, %v1103_v36 }
 0x1d1   : > { %1236 = vst [vmem:[%s2069_s22] sm:$0xff] %v1234_v21  ;;  %v1169_v47 = vadd.f32 %v1168_v24, %v1136_v23 }
 0x1d3   : > { %v1231_v0 = vmul.f32 %v1169_v47, %v1916_v52 }
 0x1d6   : > { %v1138_v28 = vpop.f32.mrf.mxu2 }
 0x1d7   : > { %v1171_v30 = vpop.f32.mrf.mxu3  ;;  %v1109_v31 = vpop.f32.mrf.mxu1 }
 0x1d8   : > { %v1110_v54 = vadd.f32 %v1109_v31, %v1077_v53 }
 0x1de   : > { %v1140_v33 = vpop.f32.mrf.mxu2 }
 0x1df   : > { %v1173_v39 = vpop.f32.mrf.mxu3  ;;  %v1112_v40 = vpop.f32.mrf.mxu1 }
 0x1e0   : > { %v1113_v56 = vadd.f32 %v1112_v40, %v1080_v18 }
 0x1e6   : > { %v1142_v12 = vpop.f32.mrf.mxu2 }
 0x1e7   : > { %v1175_v46 = vpop.f32.mrf.mxu3  ;;  %v1221_v49 = vpop.f32.mrf.mxu1  ;;  %v1143_v57 = vadd.f32 %v1142_v12, %v1110_v54 }
 0x1e8   : > { %v1222_v51 = vadd.f32 %v1518_v29, %v1221_v49 }
 0x1e9   : > { %v1176_v59 = vadd.f32 %v1175_v46, %v1143_v57 }
 0x1ea   : > { %v1233_v17 = vmul.f32 %v1231_v0, %v1222_v51 }
 0x1ec   : > { %v1235_v50 = vadd.f32 %v1233_v17, %v1916_v52  ;;  %v1238_v52 = vmul.f32 %v1176_v59, %v1920_v61 }
 0x1ee   : > { %v1145_v25 = vpop.f32.mrf.mxu2  ;;  %1237 = vst [vmem:[%s2069_s22 + $0x8] sm:$0xff] %v1235_v50 }
 0x1ef   : > { %v1178_v58 = vpop.f32.mrf.mxu3  ;;  %v1146_v32 = vadd.f32 %v1145_v25, %v1113_v56 }
 0x1f1   : > { %v1179_v60 = vadd.f32 %v1178_v58, %v1146_v32 }
 0x1f3   : > { %v1239_v2 = vmul.f32 %v1179_v60, %v1923_v62 }
 0x1f6   : > { %v1224_v34 = vpop.f32.mrf.mxu2 }
 0x1f7   : > { %v1225_v63 = vadd.f32 %v1518_v29, %v1224_v34  ;;  %v1227_v1 = vpop.f32.mrf.mxu3 }
 0x1f8   : > { %v1228_v45 = vadd.f32 %v1518_v29, %v1227_v1 }
 0x1f9   : > { %v1240_v22 = vmul.f32 %v1238_v52, %v1225_v63 }
 0x1fa   : > { %v1241_v38 = vmul.f32 %v1239_v2, %v1228_v45 }
 0x1fb   : > { %v1242_v3 = vadd.f32 %v1240_v22, %v1920_v61 }
 0x1fc   : > { %v1243_v37 = vadd.f32 %v1241_v38, %v1923_v62 }
 0x1fd   : > { %1244 = vst [vmem:[%s2069_s22 + $0x10] sm:$0xff] %v1242_v3 }
 0x1fe   : > { %1245 = vst [vmem:[%s2069_s22 + $0x18] sm:$0xff] %v1243_v37 }
 0x1ff   : > { %1667 = shalt.err (!%p1664_p10)
}
 0x200   : > { %s1722_s15 = smov 128   ;;  %s1723_s22 = smov 8  }
 0x201   : > { %1448 = dma.vmem_to_hbm [thread:$0]  (%p1855_p3), %s1260_s1, 512, %s1262_s28, %s1247_s20, %s1722_s15, %s1722_s15, %s1723_s22  }
 0x202 PF: > { %s1276_s29 = sand.u32 1, %s1702_s24   ;;  %p2135_p12 = scmp.ge.s32.totalorder %s1714_s27, 2 }
 0x203   : > { %s1277_s9 = scalar_lea.sflag [#allocation6], %s1276_s29 }
 0x204   : > { %p1465_p13 = pnand %p2135_p12, %p1799_p6 }
 0x206   : > { %p1466_p0 = pneg %p1465_p13 }
 0x208   : > { %1697 = dma.done.wait (%p1466_p0), %s1277_s9, 512  }
 0x209   : > { %1699 = vsyncadd (%p1466_p0), %s1277_s9, 4294966784  ;;  %p22_p5 = scmp.ge.s32.totalorder %s1837_s13, 4   ;;  %s2136_s24 = smov %s1706_s25 }
 0x20a   : > { %s2137_s25 = smov %s1710_s26  ;;  %s2138_s26 = smov %s1851_s17 }
 0x20b   : > { %s2139_s27 = smov %s1837_s13  ;;  %24 = sbr.rel (!%p22_p5) target bundleno = 9 (0x9), region = 105 }
 0x210   :  { %1283 = vsyncpa [#allocation5], 1 }
 0x211   :  { %1285 = vsyncpa [#allocation5 + $0x1], 1 }
 0x212   :  { %1286 = vsyncpa [#allocation8], 1 }
 0x213   :  { %1287 = vsyncpa [#allocation11], 1 }
 0x214   :  { %1288 = vsyncpa [#allocation6], 1 }
 0x215   :  { %1290 = vsyncpa [#allocation6 + $0x1], 1 }

</bundles_post_ra>
